<compile_context>
chip_gen: v7x
topology: tpu7x:2x2x1
jax: 0.10.0
libtpu: 0.0.40
codegen_flags: <defaults>
</compile_context>

<pallas_src>
import functools

import jax
import jax.numpy as jnp
from jax import lax
from jax.experimental import pallas as pl
from jax.experimental.pallas import tpu as pltpu

# ---------------- configuration (small, consistent with the module) ----------
B = 2            # batch
T_FRAMES = 8     # video frames (GRU sequence length)
SENT_DIM = 32    # sentence_dim
VIS_DIM = 32     # visual_output_dim (TorsoNetwork output width)
TD = 32          # transformer_dim (GRU hidden size)
MLP_MID = 4 * SENT_DIM   # MLPBlock factor=4 -> 128
LANES = 128              # packing width (one vreg lane row)

H = TD
# -------- packed weight-blob row offsets (all 8-aligned, bf16 blob) -----------
_R_W1 = 0
_R_W2 = _R_W1 + SENT_DIM            # 32
_R_WIH0 = _R_W2 + MLP_MID           # 160
_R_WHH0 = _R_WIH0 + VIS_DIM         # 192
_R_WIH1 = _R_WHH0 + H               # 224
_R_WHH1 = _R_WIH1 + H               # 256
_R_WC1T = _R_WHH1 + H               # 288  text half of wc1  (H rows)
_R_WC1V = _R_WC1T + H               # 320  video half of wc1 (H rows)
_R_WC2 = _R_WC1V + H                # 352  (3H rows)
_R_END = _R_WC2 + 3 * H             # 448

N_BIAS_ROWS = 10


# ---------------- in-kernel math helpers -------------------------------------
def _erf(x):
    # Abramowitz & Stegun 7.1.26, |err| < 1.5e-7 (not bit-exact vs torch erf,
    # but far below the bf16-matmul noise floor).
    a1, a2, a3, a4, a5 = 0.254829592, -0.284496736, 1.421413741, -1.453152027, 1.061405429
    p = 0.3275911
    sgn = jnp.where(x >= 0.0, 1.0, -1.0)
    ax = jnp.abs(x)
    t = pl.reciprocal(1.0 + p * ax, approx=True)     # EUP slot, off the VALU chain
    poly = ((((a5 * t + a4) * t + a3) * t + a2) * t + a1) * t
    y = 1.0 - poly * jnp.exp(-ax * ax)
    return sgn * y


def _gelu(x):
    # Exact (erf-based) GELU, matching PyTorch nn.GELU default.
    return 0.5 * x * (1.0 + _erf(x * 0.7071067811865476))


# ---------------- the Pallas kernel -------------------------------------------
def reward_shaping_kernel(text_ref, video_ref, w_ref, b_ref, out_ref):
    f32 = jnp.float32
    bf16 = jnp.bfloat16
    batch = text_ref.shape[0]                     # padded to a multiple of 8
    n_steps = video_ref.shape[0] // batch

    def mm(a, w_rows):
        # single-pass bf16 MXU matmul with f32 accumulation
        return jnp.dot(a.astype(bf16), w_rows, preferred_element_type=f32)

    # ---- text branch: MLPBlock + GELU (dropout is identity in eval) ----------
    h = mm(text_ref[...], w_ref[_R_W1:_R_W2, :]) + b_ref[0:1, :]
    h = _gelu(h)
    text_enc = _gelu(mm(h, w_ref[_R_W2:_R_WIH0, :]) + b_ref[1:2, :])   # (B,128), cols < TD valid

    # ---- video branch: 2-layer GRU --------------------------------------------
    # Hoisted layer-0 input projection for ALL time steps (r/z biases folded in).
    xp_all = mm(video_ref[...], w_ref[_R_WIH0:_R_WHH0, :]) + b_ref[2:3, :]   # (T*B, 128)

    whh0 = w_ref[_R_WHH0:_R_WIH1, :]      # (H, 128)  fused (r|z|n), lane-padded
    wih1 = w_ref[_R_WIH1:_R_WHH1, :]
    whh1 = w_ref[_R_WHH1:_R_WC1T, :]

    # biases pre-broadcast once (outside the unrolled recurrence)
    bh0n_b = jnp.broadcast_to(b_ref[3:4, :], (batch, LANES))   # only n-gate cols nonzero
    bx1_b = jnp.broadcast_to(b_ref[4:5, :], (batch, LANES))    # bih1 + bhh1(r,z)
    bh1n_b = jnp.broadcast_to(b_ref[5:6, :], (batch, LANES))   # only n-gate cols nonzero

    def cell(g_in, g_h, h_prev):
        # one sigmoid on the contiguous (B, 2H) r|z slab
        rz = jax.nn.sigmoid(g_in[:, :2 * H] + g_h[:, :2 * H])
        r = rz[:, :H]
        z = rz[:, H:2 * H]
        n = jnp.tanh(g_in[:, 2 * H:3 * H] + r * g_h[:, 2 * H:3 * H])
        return (1.0 - z) * n + z * h_prev

    h0 = jnp.zeros((batch, H), f32)
    h1 = jnp.zeros((batch, H), f32)

    # fully unrolled recurrence (static T=8); batch padded to 8 so every slice
    # below is a sublane-aligned full vreg tile.
    for t in range(n_steps):
        xp = xp_all[t * batch:(t + 1) * batch, :]                 # (B, 128)

        gh0 = jnp.dot(h0.astype(bf16), whh0, preferred_element_type=f32) + bh0n_b
        h0 = cell(xp, gh0, h0)

        gx1 = jnp.dot(h0.astype(bf16), wih1, preferred_element_type=f32) + bx1_b
        gh1 = jnp.dot(h1.astype(bf16), whh1, preferred_element_type=f32) + bh1n_b
        h1 = cell(gx1, gh1, h1)

    # LayerNorm(eps=1e-6) over the feature axis (biased variance, like PyTorch)
    mean = jnp.mean(h1, axis=-1, keepdims=True)
    var = jnp.mean(jnp.square(h1 - mean), axis=-1, keepdims=True)
    vid_enc = (h1 - mean) * lax.rsqrt(var + 1e-6) * b_ref[6:7, :H] + b_ref[7:8, :H]

    # ---- classifier head: concat replaced by split weight; only the exactly
    # valid H text columns are consumed, so no zero-padded rows live in the blob.
    pre = (mm(text_enc[:, :H], w_ref[_R_WC1T:_R_WC1V, :])
           + mm(vid_enc, w_ref[_R_WC1V:_R_WC2, :])
           + b_ref[8:9, :])
    c = _gelu(pre)                                               # (B, 128)
    out_ref[...] = mm(c[:, :3 * H], w_ref[_R_WC2:_R_END, :]) + b_ref[9:10, :]


# ---------------- host-side parameter packing ---------------------------------
def _padc(w, cols=LANES):
    return jnp.pad(w, ((0, 0), (0, cols - w.shape[1])))


def pack_params(p):
    """Pack the 18 parameter tensors into one bf16 weight blob and one f32 bias blob."""
    def fuse_w(w3):   # (3, in, H) -> (in, 3H), gate order (r, z, n)
        return jnp.concatenate([w3[0], w3[1], w3[2]], axis=-1)

    def fuse_b(b3):   # (3, 1, H) -> (1, 3H)
        return jnp.concatenate([b3[0], b3[1], b3[2]], axis=-1)

    wih0, whh0 = fuse_w(p["wih0"]), fuse_w(p["whh0"])
    wih1, whh1 = fuse_w(p["wih1"]), fuse_w(p["whh1"])
    bih0, bhh0 = fuse_b(p["bih0"]), fuse_b(p["bhh0"])
    bih1, bhh1 = fuse_b(p["bih1"]), fuse_b(p["bhh1"])

    wblob = jnp.concatenate([
        p["w1"],                         # rows   0: 32   (SENT, 128)
        _padc(p["w2"]),                  # rows  32:160   (128, TD -> 128)
        _padc(wih0),                     # rows 160:192
        _padc(whh0),                     # rows 192:224
        _padc(wih1),                     # rows 224:256
        _padc(whh1),                     # rows 256:288
        _padc(p["wc1"][:H]),             # rows 288:320   wc1 text half  (H, 3H -> 128)
        _padc(p["wc1"][H:]),             # rows 320:352   wc1 video half (H, 3H -> 128)
        _padc(p["wc2"]),                 # rows 352:448   (3H, 2 -> 128)
    ], axis=0)
    assert wblob.shape == (_R_END, LANES)

    zH = jnp.zeros((1, H), jnp.float32)
    # fold bih fully + bhh for r,z gates; keep bhh_n separate (sits inside r*(...))
    bx0 = bih0 + jnp.concatenate([bhh0[:, :2 * H], zH], axis=-1)    # (1, 3H)
    bh0n = jnp.concatenate([zH, zH, bhh0[:, 2 * H:]], axis=-1)      # (1, 3H)
    bx1 = bih1 + jnp.concatenate([bhh1[:, :2 * H], zH], axis=-1)
    bh1n = jnp.concatenate([zH, zH, bhh1[:, 2 * H:]], axis=-1)

    bblob = jnp.concatenate([
        _padc(p["b1"]),      # row 0
        _padc(p["b2"]),      # row 1
        _padc(bx0),          # row 2
        _padc(bh0n),         # row 3
        _padc(bx1),          # row 4
        _padc(bh1n),         # row 5
        _padc(p["ln_g"]),    # row 6
        _padc(p["ln_b"]),    # row 7
        _padc(p["bc1"]),     # row 8
        _padc(p["bc2"]),     # row 9
    ], axis=0)
    assert bblob.shape == (N_BIAS_ROWS, LANES)

    # padding invariants (the kernel slices explicitly, but keep these true/documented)
    assert bool(jnp.all(wblob[_R_W2:_R_WIH0, TD:] == 0))    # w2 cols >= TD are zero
    assert bool(jnp.all(bblob[1, TD:] == 0))                # b2 cols >= TD are zero
    assert bool(jnp.all(bblob[8, 3 * H:] == 0))             # bc1 cols >= 3H are zero

    return wblob.astype(jnp.bfloat16), bblob


# ---------------- wrapper ------------------------------------------------------
@jax.jit
def reward_shaping_forward(text, video_latent, wblob, bblob):
    """text: (B, SENT_DIM); video_latent: (B, T, VIS_DIM) (batch-first, like PyTorch)."""
    batch = text.shape[0]
    bpad = -(-batch // 8) * 8                     # sublane-aligned batch (>= 8)
    text_p = jnp.pad(text, ((0, bpad - batch), (0, 0)))
    video_p = jnp.pad(video_latent, ((0, bpad - batch), (0, 0), (0, 0)))
    # time-major, flattened: row t*bpad + b  ->  frame t of batch element b
    video_flat = jnp.transpose(video_p, (1, 0, 2)).reshape(-1, video_p.shape[-1])

    vmem = pl.BlockSpec(memory_space=pltpu.MemorySpace.VMEM)
    out = pl.pallas_call(
        reward_shaping_kernel,
        out_shape=jax.ShapeDtypeStruct((bpad, LANES), jnp.float32),
        in_specs=[vmem, vmem, vmem, vmem],
        out_specs=vmem,
    )(text_p, video_flat, wblob, bblob)
    return out[:batch, :2]        # drop batch / lane padding of the logits


# ---------------- deterministic parameter init (PyTorch-style layout) ----------
def init_params(key):
    keys = iter(jax.random.split(key, 32))

    def w(shape, scale=0.1):
        return jax.random.normal(next(keys), shape, jnp.float32) * scale

    return dict(
        # text MLPBlock (weights pre-transposed to (in, out))
        w1=w((SENT_DIM, MLP_MID)), b1=w((1, MLP_MID)),
        w2=w((MLP_MID, TD)), b2=w((1, TD)),
        # GRU layer 0 (gate order r, z, n), (3, in, hidden)
        wih0=w((3, VIS_DIM, TD)), whh0=w((3, TD, TD)),
        bih0=w((3, 1, TD)), bhh0=w((3, 1, TD)),
        # GRU layer 1
        wih1=w((3, TD, TD)), whh1=w((3, TD, TD)),
        bih1=w((3, 1, TD)), bhh1=w((3, 1, TD)),
        # LayerNorm after GRU
        ln_g=jnp.ones((1, TD), jnp.float32), ln_b=jnp.zeros((1, TD), jnp.float32),
        # classifier
        wc1=w((2 * TD, 3 * TD)), bc1=w((1, 3 * TD)),
        wc2=w((3 * TD, 2)), bc2=w((1, 2)),
    )


# ---------------- pure-JAX f32 reference (for correctness check) ---------------
def reference_forward(text, video_latent, p):
    gelu = functools.partial(jax.nn.gelu, approximate=False)
    h = gelu(text @ p["w1"] + p["b1"])
    text_enc = gelu(h @ p["w2"] + p["b2"])

    def cell(x, h_prev, wih, whh, bih, bhh):
        r = jax.nn.sigmoid(x @ wih[0] + bih[0] + h_prev @ whh[0] + bhh[0])
        z = jax.nn.sigmoid(x @ wih[1] + bih[1] + h_prev @ whh[1] + bhh[1])
        n = jnp.tanh(x @ wih[2] + bih[2] + r * (h_prev @ whh[2] + bhh[2]))
        return (1.0 - z) * n + z * h_prev

    h0 = jnp.zeros((text.shape[0], TD), jnp.float32)
    h1 = jnp.zeros_like(h0)
    for ti in range(video_latent.shape[1]):
        x_t = video_latent[:, ti]
        h0 = cell(x_t, h0, p["wih0"], p["whh0"], p["bih0"], p["bhh0"])
        h1 = cell(h0, h1, p["wih1"], p["whh1"], p["bih1"], p["bhh1"])
    mean = h1.mean(-1, keepdims=True)
    var = ((h1 - mean) ** 2).mean(-1, keepdims=True)
    vid = (h1 - mean) / jnp.sqrt(var + 1e-6) * p["ln_g"] + p["ln_b"]
    cat = jnp.concatenate([text_enc, vid], axis=-1)
    c = gelu(cat @ p["wc1"] + p["bc1"])
    return c @ p["wc2"] + p["bc2"]


if __name__ == "__main__":
    key = jax.random.PRNGKey(0)
    k_text, k_vid, k_par = jax.random.split(key, 3)

    text = jax.random.normal(k_text, (B, SENT_DIM), jnp.float32)
    video_latent = jax.random.normal(k_vid, (B, T_FRAMES, VIS_DIM), jnp.float32)
    params = init_params(k_par)

    # one-time host-side parameter packing (bf16 weight blob + f32 bias blob)
    wblob, bblob = pack_params(params)

    logits = reward_shaping_forward(text, video_latent, wblob, bblob)
    logits = jax.block_until_ready(logits)

    ref = reference_forward(text, video_latent, params)
    assert logits.shape == (B, 2)
    # bf16 single-pass matmuls over 16 sequential GRU cells -> relaxed tolerance
    assert jnp.allclose(logits, ref, atol=5e-2, rtol=5e-2), (logits, ref)

    print("KERNEL_OK")
</pallas_src>

<mosaic_0001>
module attributes {stable_mosaic.version = 11 : i64} {
  func.func @reward_shaping_kernel(%arg0: memref<8x32xf32, #tpu.memory_space<vmem>>, %arg1: memref<64x32xf32, #tpu.memory_space<vmem>>, %arg2: memref<448x128xbf16, #tpu.memory_space<vmem>>, %arg3: memref<10x128xf32, #tpu.memory_space<vmem>>, %arg4: memref<8x128xf32, #tpu.memory_space<vmem>>) attributes {dimension_semantics = [], scalar_prefetch = 0 : i64, scratch_operands = 0 : i64, tpu.core_type = #tpu.core_type<tc>} {
    %c0 = arith.constant 0 : index
    %c0_0 = arith.constant 0 : index
    %0 = vector.load %arg0[%c0, %c0_0] : memref<8x32xf32, #tpu.memory_space<vmem>>, vector<8x32xf32>
    %c0_1 = arith.constant 0 : index
    %c0_2 = arith.constant 0 : index
    %1 = vector.load %arg2[%c0_1, %c0_2] : memref<448x128xbf16, #tpu.memory_space<vmem>>, vector<32x128xbf16>
    %2 = arith.truncf %0 : vector<8x32xf32> to vector<8x32xbf16>
    %cst = arith.constant dense<0.000000e+00> : vector<8x128xf32>
    %3 = tpu.matmul %2, %1, %cst {dimension_numbers = #tpu.dot_dimension_numbers<[1], [0], [0], [1], [0, 0, 1, 1], [], []>} : vector<8x32xbf16>, vector<32x128xbf16>, vector<8x128xf32> -> vector<8x128xf32>
    %c0_3 = arith.constant 0 : index
    %c0_4 = arith.constant 0 : index
    %4 = vector.load %arg3[%c0_3, %c0_4] : memref<10x128xf32, #tpu.memory_space<vmem>>, vector<1x128xf32>
    %5 = vector.broadcast %4 : vector<1x128xf32> to vector<8x128xf32>
    %6 = arith.addf %3, %5 : vector<8x128xf32>
    %cst_5 = arith.constant 5.000000e-01 : f32
    %7 = vector.broadcast %cst_5 : f32 to vector<8x128xf32>
    %8 = arith.mulf %7, %6 : vector<8x128xf32>
    %cst_6 = arith.constant 0.707106769 : f32
    %9 = vector.broadcast %cst_6 : f32 to vector<8x128xf32>
    %10 = arith.mulf %6, %9 : vector<8x128xf32>
    %cst_7 = arith.constant 0.000000e+00 : f32
    %11 = vector.broadcast %cst_7 : f32 to vector<8x128xf32>
    %12 = arith.cmpf oge, %10, %11 : vector<8x128xf32>
    %cst_8 = arith.constant 1.000000e+00 : f32
    %cst_9 = arith.constant -1.000000e+00 : f32
    %13 = vector.broadcast %cst_8 : f32 to vector<8x128xf32>
    %14 = vector.broadcast %cst_9 : f32 to vector<8x128xf32>
    %15 = arith.select %12, %13, %14 : vector<8x128xi1>, vector<8x128xf32>
    %16 = math.absf %10 : vector<8x128xf32>
    %cst_10 = arith.constant 0.327591091 : f32
    %17 = vector.broadcast %cst_10 : f32 to vector<8x128xf32>
    %18 = arith.mulf %17, %16 : vector<8x128xf32>
    %cst_11 = arith.constant 1.000000e+00 : f32
    %19 = vector.broadcast %cst_11 : f32 to vector<8x128xf32>
    %20 = arith.addf %19, %18 : vector<8x128xf32>
    %21 = tpu.reciprocal %20 {approx = true} : vector<8x128xf32> -> vector<8x128xf32>
    %cst_12 = arith.constant 1.06140542 : f32
    %22 = vector.broadcast %cst_12 : f32 to vector<8x128xf32>
    %23 = arith.mulf %22, %21 : vector<8x128xf32>
    %cst_13 = arith.constant -1.45315206 : f32
    %24 = vector.broadcast %cst_13 : f32 to vector<8x128xf32>
    %25 = arith.addf %23, %24 : vector<8x128xf32>
    %26 = arith.mulf %25, %21 : vector<8x128xf32>
    %cst_14 = arith.constant 1.42141378 : f32
    %27 = vector.broadcast %cst_14 : f32 to vector<8x128xf32>
    %28 = arith.addf %26, %27 : vector<8x128xf32>
    %29 = arith.mulf %28, %21 : vector<8x128xf32>
    %cst_15 = arith.constant -0.284496725 : f32
    %30 = vector.broadcast %cst_15 : f32 to vector<8x128xf32>
    %31 = arith.addf %29, %30 : vector<8x128xf32>
    %32 = arith.mulf %31, %21 : vector<8x128xf32>
    %cst_16 = arith.constant 0.254829586 : f32
    %33 = vector.broadcast %cst_16 : f32 to vector<8x128xf32>
    %34 = arith.addf %32, %33 : vector<8x128xf32>
    %35 = arith.mulf %34, %21 : vector<8x128xf32>
    %cst_17 = arith.constant 0.000000e+00 : f32
    %36 = vector.broadcast %cst_17 : f32 to vector<8x128xf32>
    %37 = arith.subf %36, %16 : vector<8x128xf32>
    %38 = arith.mulf %37, %16 : vector<8x128xf32>
    %39 = math.exp %38 : vector<8x128xf32>
    %40 = arith.mulf %35, %39 : vector<8x128xf32>
    %cst_18 = arith.constant 1.000000e+00 : f32
    %41 = vector.broadcast %cst_18 : f32 to vector<8x128xf32>
    %42 = arith.subf %41, %40 : vector<8x128xf32>
    %43 = arith.mulf %15, %42 : vector<8x128xf32>
    %cst_19 = arith.constant 1.000000e+00 : f32
    %44 = vector.broadcast %cst_19 : f32 to vector<8x128xf32>
    %45 = arith.addf %44, %43 : vector<8x128xf32>
    %46 = arith.mulf %8, %45 : vector<8x128xf32>
    %c32 = arith.constant 32 : index
    %c0_20 = arith.constant 0 : index
    %47 = vector.load %arg2[%c32, %c0_20] : memref<448x128xbf16, #tpu.memory_space<vmem>>, vector<128x128xbf16>
    %48 = arith.truncf %46 : vector<8x128xf32> to vector<8x128xbf16>
    %cst_21 = arith.constant dense<0.000000e+00> : vector<8x128xf32>
    %49 = tpu.matmul %48, %47, %cst_21 {dimension_numbers = #tpu.dot_dimension_numbers<[1], [0], [0], [1], [0, 0, 1, 1], [], []>} : vector<8x128xbf16>, vector<128x128xbf16>, vector<8x128xf32> -> vector<8x128xf32>
    %c1 = arith.constant 1 : index
    %c0_22 = arith.constant 0 : index
    %50 = vector.load %arg3[%c1, %c0_22] : memref<10x128xf32, #tpu.memory_space<vmem>>, vector<1x128xf32>
    %51 = vector.broadcast %50 : vector<1x128xf32> to vector<8x128xf32>
    %52 = arith.addf %49, %51 : vector<8x128xf32>
    %cst_23 = arith.constant 5.000000e-01 : f32
    %53 = vector.broadcast %cst_23 : f32 to vector<8x128xf32>
    %54 = arith.mulf %53, %52 : vector<8x128xf32>
    %cst_24 = arith.constant 0.707106769 : f32
    %55 = vector.broadcast %cst_24 : f32 to vector<8x128xf32>
    %56 = arith.mulf %52, %55 : vector<8x128xf32>
    %cst_25 = arith.constant 0.000000e+00 : f32
    %57 = vector.broadcast %cst_25 : f32 to vector<8x128xf32>
    %58 = arith.cmpf oge, %56, %57 : vector<8x128xf32>
    %cst_26 = arith.constant 1.000000e+00 : f32
    %cst_27 = arith.constant -1.000000e+00 : f32
    %59 = vector.broadcast %cst_26 : f32 to vector<8x128xf32>
    %60 = vector.broadcast %cst_27 : f32 to vector<8x128xf32>
    %61 = arith.select %58, %59, %60 : vector<8x128xi1>, vector<8x128xf32>
    %62 = math.absf %56 : vector<8x128xf32>
    %cst_28 = arith.constant 0.327591091 : f32
    %63 = vector.broadcast %cst_28 : f32 to vector<8x128xf32>
    %64 = arith.mulf %63, %62 : vector<8x128xf32>
    %cst_29 = arith.constant 1.000000e+00 : f32
    %65 = vector.broadcast %cst_29 : f32 to vector<8x128xf32>
    %66 = arith.addf %65, %64 : vector<8x128xf32>
    %67 = tpu.reciprocal %66 {approx = true} : vector<8x128xf32> -> vector<8x128xf32>
    %cst_30 = arith.constant 1.06140542 : f32
    %68 = vector.broadcast %cst_30 : f32 to vector<8x128xf32>
    %69 = arith.mulf %68, %67 : vector<8x128xf32>
    %cst_31 = arith.constant -1.45315206 : f32
    %70 = vector.broadcast %cst_31 : f32 to vector<8x128xf32>
    %71 = arith.addf %69, %70 : vector<8x128xf32>
    %72 = arith.mulf %71, %67 : vector<8x128xf32>
    %cst_32 = arith.constant 1.42141378 : f32
    %73 = vector.broadcast %cst_32 : f32 to vector<8x128xf32>
    %74 = arith.addf %72, %73 : vector<8x128xf32>
    %75 = arith.mulf %74, %67 : vector<8x128xf32>
    %cst_33 = arith.constant -0.284496725 : f32
    %76 = vector.broadcast %cst_33 : f32 to vector<8x128xf32>
    %77 = arith.addf %75, %76 : vector<8x128xf32>
    %78 = arith.mulf %77, %67 : vector<8x128xf32>
    %cst_34 = arith.constant 0.254829586 : f32
    %79 = vector.broadcast %cst_34 : f32 to vector<8x128xf32>
    %80 = arith.addf %78, %79 : vector<8x128xf32>
    %81 = arith.mulf %80, %67 : vector<8x128xf32>
    %cst_35 = arith.constant 0.000000e+00 : f32
    %82 = vector.broadcast %cst_35 : f32 to vector<8x128xf32>
    %83 = arith.subf %82, %62 : vector<8x128xf32>
    %84 = arith.mulf %83, %62 : vector<8x128xf32>
    %85 = math.exp %84 : vector<8x128xf32>
    %86 = arith.mulf %81, %85 : vector<8x128xf32>
    %cst_36 = arith.constant 1.000000e+00 : f32
    %87 = vector.broadcast %cst_36 : f32 to vector<8x128xf32>
    %88 = arith.subf %87, %86 : vector<8x128xf32>
    %89 = arith.mulf %61, %88 : vector<8x128xf32>
    %cst_37 = arith.constant 1.000000e+00 : f32
    %90 = vector.broadcast %cst_37 : f32 to vector<8x128xf32>
    %91 = arith.addf %90, %89 : vector<8x128xf32>
    %92 = arith.mulf %54, %91 : vector<8x128xf32>
    %c0_38 = arith.constant 0 : index
    %c0_39 = arith.constant 0 : index
    %93 = vector.load %arg1[%c0_38, %c0_39] : memref<64x32xf32, #tpu.memory_space<vmem>>, vector<64x32xf32>
    %c160 = arith.constant 160 : index
    %c0_40 = arith.constant 0 : index
    %94 = vector.load %arg2[%c160, %c0_40] : memref<448x128xbf16, #tpu.memory_space<vmem>>, vector<32x128xbf16>
    %95 = arith.truncf %93 : vector<64x32xf32> to vector<64x32xbf16>
    %cst_41 = arith.constant dense<0.000000e+00> : vector<64x128xf32>
    %96 = tpu.matmul %95, %94, %cst_41 {dimension_numbers = #tpu.dot_dimension_numbers<[1], [0], [0], [1], [0, 0, 1, 1], [], []>} : vector<64x32xbf16>, vector<32x128xbf16>, vector<64x128xf32> -> vector<64x128xf32>
    %c2 = arith.constant 2 : index
    %c0_42 = arith.constant 0 : index
    %97 = vector.load %arg3[%c2, %c0_42] : memref<10x128xf32, #tpu.memory_space<vmem>>, vector<1x128xf32>
    %98 = vector.broadcast %97 : vector<1x128xf32> to vector<64x128xf32>
    %99 = arith.addf %96, %98 : vector<64x128xf32>
    %c192 = arith.constant 192 : index
    %c0_43 = arith.constant 0 : index
    %100 = vector.load %arg2[%c192, %c0_43] : memref<448x128xbf16, #tpu.memory_space<vmem>>, vector<32x128xbf16>
    %c224 = arith.constant 224 : index
    %c0_44 = arith.constant 0 : index
    %101 = vector.load %arg2[%c224, %c0_44] : memref<448x128xbf16, #tpu.memory_space<vmem>>, vector<32x128xbf16>
    %c256 = arith.constant 256 : index
    %c0_45 = arith.constant 0 : index
    %102 = vector.load %arg2[%c256, %c0_45] : memref<448x128xbf16, #tpu.memory_space<vmem>>, vector<32x128xbf16>
    %c3 = arith.constant 3 : index
    %c0_46 = arith.constant 0 : index
    %103 = vector.load %arg3[%c3, %c0_46] : memref<10x128xf32, #tpu.memory_space<vmem>>, vector<1x128xf32>
    %104 = vector.shape_cast %103 : vector<1x128xf32> to vector<1x128xf32>
    %105 = vector.broadcast %104 : vector<1x128xf32> to vector<8x128xf32>
    %c4 = arith.constant 4 : index
    %c0_47 = arith.constant 0 : index
    %106 = vector.load %arg3[%c4, %c0_47] : memref<10x128xf32, #tpu.memory_space<vmem>>, vector<1x128xf32>
    %107 = vector.shape_cast %106 : vector<1x128xf32> to vector<1x128xf32>
    %108 = vector.broadcast %107 : vector<1x128xf32> to vector<8x128xf32>
    %c5 = arith.constant 5 : index
    %c0_48 = arith.constant 0 : index
    %109 = vector.load %arg3[%c5, %c0_48] : memref<10x128xf32, #tpu.memory_space<vmem>>, vector<1x128xf32>
    %110 = vector.shape_cast %109 : vector<1x128xf32> to vector<1x128xf32>
    %111 = vector.broadcast %110 : vector<1x128xf32> to vector<8x128xf32>
    %cst_49 = arith.constant 0.000000e+00 : f32
    %112 = vector.broadcast %cst_49 : f32 to vector<8x32xf32>
    %cst_50 = arith.constant 0.000000e+00 : f32
    %113 = vector.broadcast %cst_50 : f32 to vector<8x32xf32>
    %114 = vector.extract_strided_slice %99 {offsets = [0, 0], sizes = [8, 128], strides = [1, 1]} : vector<64x128xf32> to vector<8x128xf32>
    %115 = arith.truncf %112 : vector<8x32xf32> to vector<8x32xbf16>
    %cst_51 = arith.constant dense<0.000000e+00> : vector<8x128xf32>
    %116 = tpu.matmul %115, %100, %cst_51 {dimension_numbers = #tpu.dot_dimension_numbers<[1], [0], [0], [1], [0, 0, 1, 1], [], []>} : vector<8x32xbf16>, vector<32x128xbf16>, vector<8x128xf32> -> vector<8x128xf32>
    %117 = arith.addf %116, %105 : vector<8x128xf32>
    %118 = vector.extract_strided_slice %114 {offsets = [0, 0], sizes = [8, 64], strides = [1, 1]} : vector<8x128xf32> to vector<8x64xf32>
    %119 = vector.extract_strided_slice %117 {offsets = [0, 0], sizes = [8, 64], strides = [1, 1]} : vector<8x128xf32> to vector<8x64xf32>
    %120 = arith.addf %118, %119 : vector<8x64xf32>
    %121 = arith.negf %120 : vector<8x64xf32>
    %122 = math.exp %121 : vector<8x64xf32>
    %cst_52 = arith.constant 1.000000e+00 : f32
    %123 = vector.broadcast %cst_52 : f32 to vector<8x64xf32>
    %124 = arith.addf %123, %122 : vector<8x64xf32>
    %125 = arith.divf %123, %124 : vector<8x64xf32>
    %126 = vector.extract_strided_slice %125 {offsets = [0, 0], sizes = [8, 32], strides = [1, 1]} : vector<8x64xf32> to vector<8x32xf32>
    %127 = vector.extract_strided_slice %125 {offsets = [0, 32], sizes = [8, 32], strides = [1, 1]} : vector<8x64xf32> to vector<8x32xf32>
    %128 = vector.extract_strided_slice %114 {offsets = [0, 64], sizes = [8, 32], strides = [1, 1]} : vector<8x128xf32> to vector<8x32xf32>
    %129 = vector.extract_strided_slice %117 {offsets = [0, 64], sizes = [8, 32], strides = [1, 1]} : vector<8x128xf32> to vector<8x32xf32>
    %130 = arith.mulf %126, %129 : vector<8x32xf32>
    %131 = arith.addf %128, %130 : vector<8x32xf32>
    %132 = math.tanh %131 : vector<8x32xf32>
    %cst_53 = arith.constant 1.000000e+00 : f32
    %133 = vector.broadcast %cst_53 : f32 to vector<8x32xf32>
    %134 = arith.subf %133, %127 : vector<8x32xf32>
    %135 = arith.mulf %134, %132 : vector<8x32xf32>
    %136 = arith.mulf %127, %112 : vector<8x32xf32>
    %137 = arith.addf %135, %136 : vector<8x32xf32>
    %138 = arith.truncf %137 : vector<8x32xf32> to vector<8x32xbf16>
    %cst_54 = arith.constant dense<0.000000e+00> : vector<8x128xf32>
    %139 = tpu.matmul %138, %101, %cst_54 {dimension_numbers = #tpu.dot_dimension_numbers<[1], [0], [0], [1], [0, 0, 1, 1], [], []>} : vector<8x32xbf16>, vector<32x128xbf16>, vector<8x128xf32> -> vector<8x128xf32>
    %140 = arith.addf %139, %108 : vector<8x128xf32>
    %141 = arith.truncf %113 : vector<8x32xf32> to vector<8x32xbf16>
    %cst_55 = arith.constant dense<0.000000e+00> : vector<8x128xf32>
    %142 = tpu.matmul %141, %102, %cst_55 {dimension_numbers = #tpu.dot_dimension_numbers<[1], [0], [0], [1], [0, 0, 1, 1], [], []>} : vector<8x32xbf16>, vector<32x128xbf16>, vector<8x128xf32> -> vector<8x128xf32>
    %143 = arith.addf %142, %111 : vector<8x128xf32>
    %144 = vector.extract_strided_slice %140 {offsets = [0, 0], sizes = [8, 64], strides = [1, 1]} : vector<8x128xf32> to vector<8x64xf32>
    %145 = vector.extract_strided_slice %143 {offsets = [0, 0], sizes = [8, 64], strides = [1, 1]} : vector<8x128xf32> to vector<8x64xf32>
    %146 = arith.addf %144, %145 : vector<8x64xf32>
    %147 = arith.negf %146 : vector<8x64xf32>
    %148 = math.exp %147 : vector<8x64xf32>
    %cst_56 = arith.constant 1.000000e+00 : f32
    %149 = vector.broadcast %cst_56 : f32 to vector<8x64xf32>
    %150 = arith.addf %149, %148 : vector<8x64xf32>
    %151 = arith.divf %149, %150 : vector<8x64xf32>
    %152 = vector.extract_strided_slice %151 {offsets = [0, 0], sizes = [8, 32], strides = [1, 1]} : vector<8x64xf32> to vector<8x32xf32>
    %153 = vector.extract_strided_slice %151 {offsets = [0, 32], sizes = [8, 32], strides = [1, 1]} : vector<8x64xf32> to vector<8x32xf32>
    %154 = vector.extract_strided_slice %140 {offsets = [0, 64], sizes = [8, 32], strides = [1, 1]} : vector<8x128xf32> to vector<8x32xf32>
    %155 = vector.extract_strided_slice %143 {offsets = [0, 64], sizes = [8, 32], strides = [1, 1]} : vector<8x128xf32> to vector<8x32xf32>
    %156 = arith.mulf %152, %155 : vector<8x32xf32>
    %157 = arith.addf %154, %156 : vector<8x32xf32>
    %158 = math.tanh %157 : vector<8x32xf32>
    %cst_57 = arith.constant 1.000000e+00 : f32
    %159 = vector.broadcast %cst_57 : f32 to vector<8x32xf32>
    %160 = arith.subf %159, %153 : vector<8x32xf32>
    %161 = arith.mulf %160, %158 : vector<8x32xf32>
    %162 = arith.mulf %153, %113 : vector<8x32xf32>
    %163 = arith.addf %161, %162 : vector<8x32xf32>
    %164 = vector.extract_strided_slice %99 {offsets = [8, 0], sizes = [8, 128], strides = [1, 1]} : vector<64x128xf32> to vector<8x128xf32>
    %165 = arith.truncf %137 : vector<8x32xf32> to vector<8x32xbf16>
    %cst_58 = arith.constant dense<0.000000e+00> : vector<8x128xf32>
    %166 = tpu.matmul %165, %100, %cst_58 {dimension_numbers = #tpu.dot_dimension_numbers<[1], [0], [0], [1], [0, 0, 1, 1], [], []>} : vector<8x32xbf16>, vector<32x128xbf16>, vector<8x128xf32> -> vector<8x128xf32>
    %167 = arith.addf %166, %105 : vector<8x128xf32>
    %168 = vector.extract_strided_slice %164 {offsets = [0, 0], sizes = [8, 64], strides = [1, 1]} : vector<8x128xf32> to vector<8x64xf32>
    %169 = vector.extract_strided_slice %167 {offsets = [0, 0], sizes = [8, 64], strides = [1, 1]} : vector<8x128xf32> to vector<8x64xf32>
    %170 = arith.addf %168, %169 : vector<8x64xf32>
    %171 = arith.negf %170 : vector<8x64xf32>
    %172 = math.exp %171 : vector<8x64xf32>
    %cst_59 = arith.constant 1.000000e+00 : f32
    %173 = vector.broadcast %cst_59 : f32 to vector<8x64xf32>
    %174 = arith.addf %173, %172 : vector<8x64xf32>
    %175 = arith.divf %173, %174 : vector<8x64xf32>
    %176 = vector.extract_strided_slice %175 {offsets = [0, 0], sizes = [8, 32], strides = [1, 1]} : vector<8x64xf32> to vector<8x32xf32>
    %177 = vector.extract_strided_slice %175 {offsets = [0, 32], sizes = [8, 32], strides = [1, 1]} : vector<8x64xf32> to vector<8x32xf32>
    %178 = vector.extract_strided_slice %164 {offsets = [0, 64], sizes = [8, 32], strides = [1, 1]} : vector<8x128xf32> to vector<8x32xf32>
    %179 = vector.extract_strided_slice %167 {offsets = [0, 64], sizes = [8, 32], strides = [1, 1]} : vector<8x128xf32> to vector<8x32xf32>
    %180 = arith.mulf %176, %179 : vector<8x32xf32>
    %181 = arith.addf %178, %180 : vector<8x32xf32>
    %182 = math.tanh %181 : vector<8x32xf32>
    %cst_60 = arith.constant 1.000000e+00 : f32
    %183 = vector.broadcast %cst_60 : f32 to vector<8x32xf32>
    %184 = arith.subf %183, %177 : vector<8x32xf32>
    %185 = arith.mulf %184, %182 : vector<8x32xf32>
    %186 = arith.mulf %177, %137 : vector<8x32xf32>
    %187 = arith.addf %185, %186 : vector<8x32xf32>
    %188 = arith.truncf %187 : vector<8x32xf32> to vector<8x32xbf16>
    %cst_61 = arith.constant dense<0.000000e+00> : vector<8x128xf32>
    %189 = tpu.matmul %188, %101, %cst_61 {dimension_numbers = #tpu.dot_dimension_numbers<[1], [0], [0], [1], [0, 0, 1, 1], [], []>} : vector<8x32xbf16>, vector<32x128xbf16>, vector<8x128xf32> -> vector<8x128xf32>
    %190 = arith.addf %189, %108 : vector<8x128xf32>
    %191 = arith.truncf %163 : vector<8x32xf32> to vector<8x32xbf16>
    %cst_62 = arith.constant dense<0.000000e+00> : vector<8x128xf32>
    %192 = tpu.matmul %191, %102, %cst_62 {dimension_numbers = #tpu.dot_dimension_numbers<[1], [0], [0], [1], [0, 0, 1, 1], [], []>} : vector<8x32xbf16>, vector<32x128xbf16>, vector<8x128xf32> -> vector<8x128xf32>
    %193 = arith.addf %192, %111 : vector<8x128xf32>
    %194 = vector.extract_strided_slice %190 {offsets = [0, 0], sizes = [8, 64], strides = [1, 1]} : vector<8x128xf32> to vector<8x64xf32>
    %195 = vector.extract_strided_slice %193 {offsets = [0, 0], sizes = [8, 64], strides = [1, 1]} : vector<8x128xf32> to vector<8x64xf32>
    %196 = arith.addf %194, %195 : vector<8x64xf32>
    %197 = arith.negf %196 : vector<8x64xf32>
    %198 = math.exp %197 : vector<8x64xf32>
    %cst_63 = arith.constant 1.000000e+00 : f32
    %199 = vector.broadcast %cst_63 : f32 to vector<8x64xf32>
    %200 = arith.addf %199, %198 : vector<8x64xf32>
    %201 = arith.divf %199, %200 : vector<8x64xf32>
    %202 = vector.extract_strided_slice %201 {offsets = [0, 0], sizes = [8, 32], strides = [1, 1]} : vector<8x64xf32> to vector<8x32xf32>
    %203 = vector.extract_strided_slice %201 {offsets = [0, 32], sizes = [8, 32], strides = [1, 1]} : vector<8x64xf32> to vector<8x32xf32>
    %204 = vector.extract_strided_slice %190 {offsets = [0, 64], sizes = [8, 32], strides = [1, 1]} : vector<8x128xf32> to vector<8x32xf32>
    %205 = vector.extract_strided_slice %193 {offsets = [0, 64], sizes = [8, 32], strides = [1, 1]} : vector<8x128xf32> to vector<8x32xf32>
    %206 = arith.mulf %202, %205 : vector<8x32xf32>
    %207 = arith.addf %204, %206 : vector<8x32xf32>
    %208 = math.tanh %207 : vector<8x32xf32>
    %cst_64 = arith.constant 1.000000e+00 : f32
    %209 = vector.broadcast %cst_64 : f32 to vector<8x32xf32>
    %210 = arith.subf %209, %203 : vector<8x32xf32>
    %211 = arith.mulf %210, %208 : vector<8x32xf32>
    %212 = arith.mulf %203, %163 : vector<8x32xf32>
    %213 = arith.addf %211, %212 : vector<8x32xf32>
    %214 = vector.extract_strided_slice %99 {offsets = [16, 0], sizes = [8, 128], strides = [1, 1]} : vector<64x128xf32> to vector<8x128xf32>
    %215 = arith.truncf %187 : vector<8x32xf32> to vector<8x32xbf16>
    %cst_65 = arith.constant dense<0.000000e+00> : vector<8x128xf32>
    %216 = tpu.matmul %215, %100, %cst_65 {dimension_numbers = #tpu.dot_dimension_numbers<[1], [0], [0], [1], [0, 0, 1, 1], [], []>} : vector<8x32xbf16>, vector<32x128xbf16>, vector<8x128xf32> -> vector<8x128xf32>
    %217 = arith.addf %216, %105 : vector<8x128xf32>
    %218 = vector.extract_strided_slice %214 {offsets = [0, 0], sizes = [8, 64], strides = [1, 1]} : vector<8x128xf32> to vector<8x64xf32>
    %219 = vector.extract_strided_slice %217 {offsets = [0, 0], sizes = [8, 64], strides = [1, 1]} : vector<8x128xf32> to vector<8x64xf32>
    %220 = arith.addf %218, %219 : vector<8x64xf32>
    %221 = arith.negf %220 : vector<8x64xf32>
    %222 = math.exp %221 : vector<8x64xf32>
    %cst_66 = arith.constant 1.000000e+00 : f32
    %223 = vector.broadcast %cst_66 : f32 to vector<8x64xf32>
    %224 = arith.addf %223, %222 : vector<8x64xf32>
    %225 = arith.divf %223, %224 : vector<8x64xf32>
    %226 = vector.extract_strided_slice %225 {offsets = [0, 0], sizes = [8, 32], strides = [1, 1]} : vector<8x64xf32> to vector<8x32xf32>
    %227 = vector.extract_strided_slice %225 {offsets = [0, 32], sizes = [8, 32], strides = [1, 1]} : vector<8x64xf32> to vector<8x32xf32>
    %228 = vector.extract_strided_slice %214 {offsets = [0, 64], sizes = [8, 32], strides = [1, 1]} : vector<8x128xf32> to vector<8x32xf32>
    %229 = vector.extract_strided_slice %217 {offsets = [0, 64], sizes = [8, 32], strides = [1, 1]} : vector<8x128xf32> to vector<8x32xf32>
    %230 = arith.mulf %226, %229 : vector<8x32xf32>
    %231 = arith.addf %228, %230 : vector<8x32xf32>
    %232 = math.tanh %231 : vector<8x32xf32>
    %cst_67 = arith.constant 1.000000e+00 : f32
    %233 = vector.broadcast %cst_67 : f32 to vector<8x32xf32>
    %234 = arith.subf %233, %227 : vector<8x32xf32>
    %235 = arith.mulf %234, %232 : vector<8x32xf32>
    %236 = arith.mulf %227, %187 : vector<8x32xf32>
    %237 = arith.addf %235, %236 : vector<8x32xf32>
    %238 = arith.truncf %237 : vector<8x32xf32> to vector<8x32xbf16>
    %cst_68 = arith.constant dense<0.000000e+00> : vector<8x128xf32>
    %239 = tpu.matmul %238, %101, %cst_68 {dimension_numbers = #tpu.dot_dimension_numbers<[1], [0], [0], [1], [0, 0, 1, 1], [], []>} : vector<8x32xbf16>, vector<32x128xbf16>, vector<8x128xf32> -> vector<8x128xf32>
    %240 = arith.addf %239, %108 : vector<8x128xf32>
    %241 = arith.truncf %213 : vector<8x32xf32> to vector<8x32xbf16>
    %cst_69 = arith.constant dense<0.000000e+00> : vector<8x128xf32>
    %242 = tpu.matmul %241, %102, %cst_69 {dimension_numbers = #tpu.dot_dimension_numbers<[1], [0], [0], [1], [0, 0, 1, 1], [], []>} : vector<8x32xbf16>, vector<32x128xbf16>, vector<8x128xf32> -> vector<8x128xf32>
    %243 = arith.addf %242, %111 : vector<8x128xf32>
    %244 = vector.extract_strided_slice %240 {offsets = [0, 0], sizes = [8, 64], strides = [1, 1]} : vector<8x128xf32> to vector<8x64xf32>
    %245 = vector.extract_strided_slice %243 {offsets = [0, 0], sizes = [8, 64], strides = [1, 1]} : vector<8x128xf32> to vector<8x64xf32>
    %246 = arith.addf %244, %245 : vector<8x64xf32>
    %247 = arith.negf %246 : vector<8x64xf32>
    %248 = math.exp %247 : vector<8x64xf32>
    %cst_70 = arith.constant 1.000000e+00 : f32
    %249 = vector.broadcast %cst_70 : f32 to vector<8x64xf32>
    %250 = arith.addf %249, %248 : vector<8x64xf32>
    %251 = arith.divf %249, %250 : vector<8x64xf32>
    %252 = vector.extract_strided_slice %251 {offsets = [0, 0], sizes = [8, 32], strides = [1, 1]} : vector<8x64xf32> to vector<8x32xf32>
    %253 = vector.extract_strided_slice %251 {offsets = [0, 32], sizes = [8, 32], strides = [1, 1]} : vector<8x64xf32> to vector<8x32xf32>
    %254 = vector.extract_strided_slice %240 {offsets = [0, 64], sizes = [8, 32], strides = [1, 1]} : vector<8x128xf32> to vector<8x32xf32>
    %255 = vector.extract_strided_slice %243 {offsets = [0, 64], sizes = [8, 32], strides = [1, 1]} : vector<8x128xf32> to vector<8x32xf32>
    %256 = arith.mulf %252, %255 : vector<8x32xf32>
    %257 = arith.addf %254, %256 : vector<8x32xf32>
    %258 = math.tanh %257 : vector<8x32xf32>
    %cst_71 = arith.constant 1.000000e+00 : f32
    %259 = vector.broadcast %cst_71 : f32 to vector<8x32xf32>
    %260 = arith.subf %259, %253 : vector<8x32xf32>
    %261 = arith.mulf %260, %258 : vector<8x32xf32>
    %262 = arith.mulf %253, %213 : vector<8x32xf32>
    %263 = arith.addf %261, %262 : vector<8x32xf32>
    %264 = vector.extract_strided_slice %99 {offsets = [24, 0], sizes = [8, 128], strides = [1, 1]} : vector<64x128xf32> to vector<8x128xf32>
    %265 = arith.truncf %237 : vector<8x32xf32> to vector<8x32xbf16>
    %cst_72 = arith.constant dense<0.000000e+00> : vector<8x128xf32>
    %266 = tpu.matmul %265, %100, %cst_72 {dimension_numbers = #tpu.dot_dimension_numbers<[1], [0], [0], [1], [0, 0, 1, 1], [], []>} : vector<8x32xbf16>, vector<32x128xbf16>, vector<8x128xf32> -> vector<8x128xf32>
    %267 = arith.addf %266, %105 : vector<8x128xf32>
    %268 = vector.extract_strided_slice %264 {offsets = [0, 0], sizes = [8, 64], strides = [1, 1]} : vector<8x128xf32> to vector<8x64xf32>
    %269 = vector.extract_strided_slice %267 {offsets = [0, 0], sizes = [8, 64], strides = [1, 1]} : vector<8x128xf32> to vector<8x64xf32>
    %270 = arith.addf %268, %269 : vector<8x64xf32>
    %271 = arith.negf %270 : vector<8x64xf32>
    %272 = math.exp %271 : vector<8x64xf32>
    %cst_73 = arith.constant 1.000000e+00 : f32
    %273 = vector.broadcast %cst_73 : f32 to vector<8x64xf32>
    %274 = arith.addf %273, %272 : vector<8x64xf32>
    %275 = arith.divf %273, %274 : vector<8x64xf32>
    %276 = vector.extract_strided_slice %275 {offsets = [0, 0], sizes = [8, 32], strides = [1, 1]} : vector<8x64xf32> to vector<8x32xf32>
    %277 = vector.extract_strided_slice %275 {offsets = [0, 32], sizes = [8, 32], strides = [1, 1]} : vector<8x64xf32> to vector<8x32xf32>
    %278 = vector.extract_strided_slice %264 {offsets = [0, 64], sizes = [8, 32], strides = [1, 1]} : vector<8x128xf32> to vector<8x32xf32>
    %279 = vector.extract_strided_slice %267 {offsets = [0, 64], sizes = [8, 32], strides = [1, 1]} : vector<8x128xf32> to vector<8x32xf32>
    %280 = arith.mulf %276, %279 : vector<8x32xf32>
    %281 = arith.addf %278, %280 : vector<8x32xf32>
    %282 = math.tanh %281 : vector<8x32xf32>
    %cst_74 = arith.constant 1.000000e+00 : f32
    %283 = vector.broadcast %cst_74 : f32 to vector<8x32xf32>
    %284 = arith.subf %283, %277 : vector<8x32xf32>
    %285 = arith.mulf %284, %282 : vector<8x32xf32>
    %286 = arith.mulf %277, %237 : vector<8x32xf32>
    %287 = arith.addf %285, %286 : vector<8x32xf32>
    %288 = arith.truncf %287 : vector<8x32xf32> to vector<8x32xbf16>
    %cst_75 = arith.constant dense<0.000000e+00> : vector<8x128xf32>
    %289 = tpu.matmul %288, %101, %cst_75 {dimension_numbers = #tpu.dot_dimension_numbers<[1], [0], [0], [1], [0, 0, 1, 1], [], []>} : vector<8x32xbf16>, vector<32x128xbf16>, vector<8x128xf32> -> vector<8x128xf32>
    %290 = arith.addf %289, %108 : vector<8x128xf32>
    %291 = arith.truncf %263 : vector<8x32xf32> to vector<8x32xbf16>
    %cst_76 = arith.constant dense<0.000000e+00> : vector<8x128xf32>
    %292 = tpu.matmul %291, %102, %cst_76 {dimension_numbers = #tpu.dot_dimension_numbers<[1], [0], [0], [1], [0, 0, 1, 1], [], []>} : vector<8x32xbf16>, vector<32x128xbf16>, vector<8x128xf32> -> vector<8x128xf32>
    %293 = arith.addf %292, %111 : vector<8x128xf32>
    %294 = vector.extract_strided_slice %290 {offsets = [0, 0], sizes = [8, 64], strides = [1, 1]} : vector<8x128xf32> to vector<8x64xf32>
    %295 = vector.extract_strided_slice %293 {offsets = [0, 0], sizes = [8, 64], strides = [1, 1]} : vector<8x128xf32> to vector<8x64xf32>
    %296 = arith.addf %294, %295 : vector<8x64xf32>
    %297 = arith.negf %296 : vector<8x64xf32>
    %298 = math.exp %297 : vector<8x64xf32>
    %cst_77 = arith.constant 1.000000e+00 : f32
    %299 = vector.broadcast %cst_77 : f32 to vector<8x64xf32>
    %300 = arith.addf %299, %298 : vector<8x64xf32>
    %301 = arith.divf %299, %300 : vector<8x64xf32>
    %302 = vector.extract_strided_slice %301 {offsets = [0, 0], sizes = [8, 32], strides = [1, 1]} : vector<8x64xf32> to vector<8x32xf32>
    %303 = vector.extract_strided_slice %301 {offsets = [0, 32], sizes = [8, 32], strides = [1, 1]} : vector<8x64xf32> to vector<8x32xf32>
    %304 = vector.extract_strided_slice %290 {offsets = [0, 64], sizes = [8, 32], strides = [1, 1]} : vector<8x128xf32> to vector<8x32xf32>
    %305 = vector.extract_strided_slice %293 {offsets = [0, 64], sizes = [8, 32], strides = [1, 1]} : vector<8x128xf32> to vector<8x32xf32>
    %306 = arith.mulf %302, %305 : vector<8x32xf32>
    %307 = arith.addf %304, %306 : vector<8x32xf32>
    %308 = math.tanh %307 : vector<8x32xf32>
    %cst_78 = arith.constant 1.000000e+00 : f32
    %309 = vector.broadcast %cst_78 : f32 to vector<8x32xf32>
    %310 = arith.subf %309, %303 : vector<8x32xf32>
    %311 = arith.mulf %310, %308 : vector<8x32xf32>
    %312 = arith.mulf %303, %263 : vector<8x32xf32>
    %313 = arith.addf %311, %312 : vector<8x32xf32>
    %314 = vector.extract_strided_slice %99 {offsets = [32, 0], sizes = [8, 128], strides = [1, 1]} : vector<64x128xf32> to vector<8x128xf32>
    %315 = arith.truncf %287 : vector<8x32xf32> to vector<8x32xbf16>
    %cst_79 = arith.constant dense<0.000000e+00> : vector<8x128xf32>
    %316 = tpu.matmul %315, %100, %cst_79 {dimension_numbers = #tpu.dot_dimension_numbers<[1], [0], [0], [1], [0, 0, 1, 1], [], []>} : vector<8x32xbf16>, vector<32x128xbf16>, vector<8x128xf32> -> vector<8x128xf32>
    %317 = arith.addf %316, %105 : vector<8x128xf32>
    %318 = vector.extract_strided_slice %314 {offsets = [0, 0], sizes = [8, 64], strides = [1, 1]} : vector<8x128xf32> to vector<8x64xf32>
    %319 = vector.extract_strided_slice %317 {offsets = [0, 0], sizes = [8, 64], strides = [1, 1]} : vector<8x128xf32> to vector<8x64xf32>
    %320 = arith.addf %318, %319 : vector<8x64xf32>
    %321 = arith.negf %320 : vector<8x64xf32>
    %322 = math.exp %321 : vector<8x64xf32>
    %cst_80 = arith.constant 1.000000e+00 : f32
    %323 = vector.broadcast %cst_80 : f32 to vector<8x64xf32>
    %324 = arith.addf %323, %322 : vector<8x64xf32>
    %325 = arith.divf %323, %324 : vector<8x64xf32>
    %326 = vector.extract_strided_slice %325 {offsets = [0, 0], sizes = [8, 32], strides = [1, 1]} : vector<8x64xf32> to vector<8x32xf32>
    %327 = vector.extract_strided_slice %325 {offsets = [0, 32], sizes = [8, 32], strides = [1, 1]} : vector<8x64xf32> to vector<8x32xf32>
    %328 = vector.extract_strided_slice %314 {offsets = [0, 64], sizes = [8, 32], strides = [1, 1]} : vector<8x128xf32> to vector<8x32xf32>
    %329 = vector.extract_strided_slice %317 {offsets = [0, 64], sizes = [8, 32], strides = [1, 1]} : vector<8x128xf32> to vector<8x32xf32>
    %330 = arith.mulf %326, %329 : vector<8x32xf32>
    %331 = arith.addf %328, %330 : vector<8x32xf32>
    %332 = math.tanh %331 : vector<8x32xf32>
    %cst_81 = arith.constant 1.000000e+00 : f32
    %333 = vector.broadcast %cst_81 : f32 to vector<8x32xf32>
    %334 = arith.subf %333, %327 : vector<8x32xf32>
    %335 = arith.mulf %334, %332 : vector<8x32xf32>
    %336 = arith.mulf %327, %287 : vector<8x32xf32>
    %337 = arith.addf %335, %336 : vector<8x32xf32>
    %338 = arith.truncf %337 : vector<8x32xf32> to vector<8x32xbf16>
    %cst_82 = arith.constant dense<0.000000e+00> : vector<8x128xf32>
    %339 = tpu.matmul %338, %101, %cst_82 {dimension_numbers = #tpu.dot_dimension_numbers<[1], [0], [0], [1], [0, 0, 1, 1], [], []>} : vector<8x32xbf16>, vector<32x128xbf16>, vector<8x128xf32> -> vector<8x128xf32>
    %340 = arith.addf %339, %108 : vector<8x128xf32>
    %341 = arith.truncf %313 : vector<8x32xf32> to vector<8x32xbf16>
    %cst_83 = arith.constant dense<0.000000e+00> : vector<8x128xf32>
    %342 = tpu.matmul %341, %102, %cst_83 {dimension_numbers = #tpu.dot_dimension_numbers<[1], [0], [0], [1], [0, 0, 1, 1], [], []>} : vector<8x32xbf16>, vector<32x128xbf16>, vector<8x128xf32> -> vector<8x128xf32>
    %343 = arith.addf %342, %111 : vector<8x128xf32>
    %344 = vector.extract_strided_slice %340 {offsets = [0, 0], sizes = [8, 64], strides = [1, 1]} : vector<8x128xf32> to vector<8x64xf32>
    %345 = vector.extract_strided_slice %343 {offsets = [0, 0], sizes = [8, 64], strides = [1, 1]} : vector<8x128xf32> to vector<8x64xf32>
    %346 = arith.addf %344, %345 : vector<8x64xf32>
    %347 = arith.negf %346 : vector<8x64xf32>
    %348 = math.exp %347 : vector<8x64xf32>
    %cst_84 = arith.constant 1.000000e+00 : f32
    %349 = vector.broadcast %cst_84 : f32 to vector<8x64xf32>
    %350 = arith.addf %349, %348 : vector<8x64xf32>
    %351 = arith.divf %349, %350 : vector<8x64xf32>
    %352 = vector.extract_strided_slice %351 {offsets = [0, 0], sizes = [8, 32], strides = [1, 1]} : vector<8x64xf32> to vector<8x32xf32>
    %353 = vector.extract_strided_slice %351 {offsets = [0, 32], sizes = [8, 32], strides = [1, 1]} : vector<8x64xf32> to vector<8x32xf32>
    %354 = vector.extract_strided_slice %340 {offsets = [0, 64], sizes = [8, 32], strides = [1, 1]} : vector<8x128xf32> to vector<8x32xf32>
    %355 = vector.extract_strided_slice %343 {offsets = [0, 64], sizes = [8, 32], strides = [1, 1]} : vector<8x128xf32> to vector<8x32xf32>
    %356 = arith.mulf %352, %355 : vector<8x32xf32>
    %357 = arith.addf %354, %356 : vector<8x32xf32>
    %358 = math.tanh %357 : vector<8x32xf32>
    %cst_85 = arith.constant 1.000000e+00 : f32
    %359 = vector.broadcast %cst_85 : f32 to vector<8x32xf32>
    %360 = arith.subf %359, %353 : vector<8x32xf32>
    %361 = arith.mulf %360, %358 : vector<8x32xf32>
    %362 = arith.mulf %353, %313 : vector<8x32xf32>
    %363 = arith.addf %361, %362 : vector<8x32xf32>
    %364 = vector.extract_strided_slice %99 {offsets = [40, 0], sizes = [8, 128], strides = [1, 1]} : vector<64x128xf32> to vector<8x128xf32>
    %365 = arith.truncf %337 : vector<8x32xf32> to vector<8x32xbf16>
    %cst_86 = arith.constant dense<0.000000e+00> : vector<8x128xf32>
    %366 = tpu.matmul %365, %100, %cst_86 {dimension_numbers = #tpu.dot_dimension_numbers<[1], [0], [0], [1], [0, 0, 1, 1], [], []>} : vector<8x32xbf16>, vector<32x128xbf16>, vector<8x128xf32> -> vector<8x128xf32>
    %367 = arith.addf %366, %105 : vector<8x128xf32>
    %368 = vector.extract_strided_slice %364 {offsets = [0, 0], sizes = [8, 64], strides = [1, 1]} : vector<8x128xf32> to vector<8x64xf32>
    %369 = vector.extract_strided_slice %367 {offsets = [0, 0], sizes = [8, 64], strides = [1, 1]} : vector<8x128xf32> to vector<8x64xf32>
    %370 = arith.addf %368, %369 : vector<8x64xf32>
    %371 = arith.negf %370 : vector<8x64xf32>
    %372 = math.exp %371 : vector<8x64xf32>
    %cst_87 = arith.constant 1.000000e+00 : f32
    %373 = vector.broadcast %cst_87 : f32 to vector<8x64xf32>
    %374 = arith.addf %373, %372 : vector<8x64xf32>
    %375 = arith.divf %373, %374 : vector<8x64xf32>
    %376 = vector.extract_strided_slice %375 {offsets = [0, 0], sizes = [8, 32], strides = [1, 1]} : vector<8x64xf32> to vector<8x32xf32>
    %377 = vector.extract_strided_slice %375 {offsets = [0, 32], sizes = [8, 32], strides = [1, 1]} : vector<8x64xf32> to vector<8x32xf32>
    %378 = vector.extract_strided_slice %364 {offsets = [0, 64], sizes = [8, 32], strides = [1, 1]} : vector<8x128xf32> to vector<8x32xf32>
    %379 = vector.extract_strided_slice %367 {offsets = [0, 64], sizes = [8, 32], strides = [1, 1]} : vector<8x128xf32> to vector<8x32xf32>
    %380 = arith.mulf %376, %379 : vector<8x32xf32>
    %381 = arith.addf %378, %380 : vector<8x32xf32>
    %382 = math.tanh %381 : vector<8x32xf32>
    %cst_88 = arith.constant 1.000000e+00 : f32
    %383 = vector.broadcast %cst_88 : f32 to vector<8x32xf32>
    %384 = arith.subf %383, %377 : vector<8x32xf32>
    %385 = arith.mulf %384, %382 : vector<8x32xf32>
    %386 = arith.mulf %377, %337 : vector<8x32xf32>
    %387 = arith.addf %385, %386 : vector<8x32xf32>
    %388 = arith.truncf %387 : vector<8x32xf32> to vector<8x32xbf16>
    %cst_89 = arith.constant dense<0.000000e+00> : vector<8x128xf32>
    %389 = tpu.matmul %388, %101, %cst_89 {dimension_numbers = #tpu.dot_dimension_numbers<[1], [0], [0], [1], [0, 0, 1, 1], [], []>} : vector<8x32xbf16>, vector<32x128xbf16>, vector<8x128xf32> -> vector<8x128xf32>
    %390 = arith.addf %389, %108 : vector<8x128xf32>
    %391 = arith.truncf %363 : vector<8x32xf32> to vector<8x32xbf16>
    %cst_90 = arith.constant dense<0.000000e+00> : vector<8x128xf32>
    %392 = tpu.matmul %391, %102, %cst_90 {dimension_numbers = #tpu.dot_dimension_numbers<[1], [0], [0], [1], [0, 0, 1, 1], [], []>} : vector<8x32xbf16>, vector<32x128xbf16>, vector<8x128xf32> -> vector<8x128xf32>
    %393 = arith.addf %392, %111 : vector<8x128xf32>
    %394 = vector.extract_strided_slice %390 {offsets = [0, 0], sizes = [8, 64], strides = [1, 1]} : vector<8x128xf32> to vector<8x64xf32>
    %395 = vector.extract_strided_slice %393 {offsets = [0, 0], sizes = [8, 64], strides = [1, 1]} : vector<8x128xf32> to vector<8x64xf32>
    %396 = arith.addf %394, %395 : vector<8x64xf32>
    %397 = arith.negf %396 : vector<8x64xf32>
    %398 = math.exp %397 : vector<8x64xf32>
    %cst_91 = arith.constant 1.000000e+00 : f32
    %399 = vector.broadcast %cst_91 : f32 to vector<8x64xf32>
    %400 = arith.addf %399, %398 : vector<8x64xf32>
    %401 = arith.divf %399, %400 : vector<8x64xf32>
    %402 = vector.extract_strided_slice %401 {offsets = [0, 0], sizes = [8, 32], strides = [1, 1]} : vector<8x64xf32> to vector<8x32xf32>
    %403 = vector.extract_strided_slice %401 {offsets = [0, 32], sizes = [8, 32], strides = [1, 1]} : vector<8x64xf32> to vector<8x32xf32>
    %404 = vector.extract_strided_slice %390 {offsets = [0, 64], sizes = [8, 32], strides = [1, 1]} : vector<8x128xf32> to vector<8x32xf32>
    %405 = vector.extract_strided_slice %393 {offsets = [0, 64], sizes = [8, 32], strides = [1, 1]} : vector<8x128xf32> to vector<8x32xf32>
    %406 = arith.mulf %402, %405 : vector<8x32xf32>
    %407 = arith.addf %404, %406 : vector<8x32xf32>
    %408 = math.tanh %407 : vector<8x32xf32>
    %cst_92 = arith.constant 1.000000e+00 : f32
    %409 = vector.broadcast %cst_92 : f32 to vector<8x32xf32>
    %410 = arith.subf %409, %403 : vector<8x32xf32>
    %411 = arith.mulf %410, %408 : vector<8x32xf32>
    %412 = arith.mulf %403, %363 : vector<8x32xf32>
    %413 = arith.addf %411, %412 : vector<8x32xf32>
    %414 = vector.extract_strided_slice %99 {offsets = [48, 0], sizes = [8, 128], strides = [1, 1]} : vector<64x128xf32> to vector<8x128xf32>
    %415 = arith.truncf %387 : vector<8x32xf32> to vector<8x32xbf16>
    %cst_93 = arith.constant dense<0.000000e+00> : vector<8x128xf32>
    %416 = tpu.matmul %415, %100, %cst_93 {dimension_numbers = #tpu.dot_dimension_numbers<[1], [0], [0], [1], [0, 0, 1, 1], [], []>} : vector<8x32xbf16>, vector<32x128xbf16>, vector<8x128xf32> -> vector<8x128xf32>
    %417 = arith.addf %416, %105 : vector<8x128xf32>
    %418 = vector.extract_strided_slice %414 {offsets = [0, 0], sizes = [8, 64], strides = [1, 1]} : vector<8x128xf32> to vector<8x64xf32>
    %419 = vector.extract_strided_slice %417 {offsets = [0, 0], sizes = [8, 64], strides = [1, 1]} : vector<8x128xf32> to vector<8x64xf32>
    %420 = arith.addf %418, %419 : vector<8x64xf32>
    %421 = arith.negf %420 : vector<8x64xf32>
    %422 = math.exp %421 : vector<8x64xf32>
    %cst_94 = arith.constant 1.000000e+00 : f32
    %423 = vector.broadcast %cst_94 : f32 to vector<8x64xf32>
    %424 = arith.addf %423, %422 : vector<8x64xf32>
    %425 = arith.divf %423, %424 : vector<8x64xf32>
    %426 = vector.extract_strided_slice %425 {offsets = [0, 0], sizes = [8, 32], strides = [1, 1]} : vector<8x64xf32> to vector<8x32xf32>
    %427 = vector.extract_strided_slice %425 {offsets = [0, 32], sizes = [8, 32], strides = [1, 1]} : vector<8x64xf32> to vector<8x32xf32>
    %428 = vector.extract_strided_slice %414 {offsets = [0, 64], sizes = [8, 32], strides = [1, 1]} : vector<8x128xf32> to vector<8x32xf32>
    %429 = vector.extract_strided_slice %417 {offsets = [0, 64], sizes = [8, 32], strides = [1, 1]} : vector<8x128xf32> to vector<8x32xf32>
    %430 = arith.mulf %426, %429 : vector<8x32xf32>
    %431 = arith.addf %428, %430 : vector<8x32xf32>
    %432 = math.tanh %431 : vector<8x32xf32>
    %cst_95 = arith.constant 1.000000e+00 : f32
    %433 = vector.broadcast %cst_95 : f32 to vector<8x32xf32>
    %434 = arith.subf %433, %427 : vector<8x32xf32>
    %435 = arith.mulf %434, %432 : vector<8x32xf32>
    %436 = arith.mulf %427, %387 : vector<8x32xf32>
    %437 = arith.addf %435, %436 : vector<8x32xf32>
    %438 = arith.truncf %437 : vector<8x32xf32> to vector<8x32xbf16>
    %cst_96 = arith.constant dense<0.000000e+00> : vector<8x128xf32>
    %439 = tpu.matmul %438, %101, %cst_96 {dimension_numbers = #tpu.dot_dimension_numbers<[1], [0], [0], [1], [0, 0, 1, 1], [], []>} : vector<8x32xbf16>, vector<32x128xbf16>, vector<8x128xf32> -> vector<8x128xf32>
    %440 = arith.addf %439, %108 : vector<8x128xf32>
    %441 = arith.truncf %413 : vector<8x32xf32> to vector<8x32xbf16>
    %cst_97 = arith.constant dense<0.000000e+00> : vector<8x128xf32>
    %442 = tpu.matmul %441, %102, %cst_97 {dimension_numbers = #tpu.dot_dimension_numbers<[1], [0], [0], [1], [0, 0, 1, 1], [], []>} : vector<8x32xbf16>, vector<32x128xbf16>, vector<8x128xf32> -> vector<8x128xf32>
    %443 = arith.addf %442, %111 : vector<8x128xf32>
    %444 = vector.extract_strided_slice %440 {offsets = [0, 0], sizes = [8, 64], strides = [1, 1]} : vector<8x128xf32> to vector<8x64xf32>
    %445 = vector.extract_strided_slice %443 {offsets = [0, 0], sizes = [8, 64], strides = [1, 1]} : vector<8x128xf32> to vector<8x64xf32>
    %446 = arith.addf %444, %445 : vector<8x64xf32>
    %447 = arith.negf %446 : vector<8x64xf32>
    %448 = math.exp %447 : vector<8x64xf32>
    %cst_98 = arith.constant 1.000000e+00 : f32
    %449 = vector.broadcast %cst_98 : f32 to vector<8x64xf32>
    %450 = arith.addf %449, %448 : vector<8x64xf32>
    %451 = arith.divf %449, %450 : vector<8x64xf32>
    %452 = vector.extract_strided_slice %451 {offsets = [0, 0], sizes = [8, 32], strides = [1, 1]} : vector<8x64xf32> to vector<8x32xf32>
    %453 = vector.extract_strided_slice %451 {offsets = [0, 32], sizes = [8, 32], strides = [1, 1]} : vector<8x64xf32> to vector<8x32xf32>
    %454 = vector.extract_strided_slice %440 {offsets = [0, 64], sizes = [8, 32], strides = [1, 1]} : vector<8x128xf32> to vector<8x32xf32>
    %455 = vector.extract_strided_slice %443 {offsets = [0, 64], sizes = [8, 32], strides = [1, 1]} : vector<8x128xf32> to vector<8x32xf32>
    %456 = arith.mulf %452, %455 : vector<8x32xf32>
    %457 = arith.addf %454, %456 : vector<8x32xf32>
    %458 = math.tanh %457 : vector<8x32xf32>
    %cst_99 = arith.constant 1.000000e+00 : f32
    %459 = vector.broadcast %cst_99 : f32 to vector<8x32xf32>
    %460 = arith.subf %459, %453 : vector<8x32xf32>
    %461 = arith.mulf %460, %458 : vector<8x32xf32>
    %462 = arith.mulf %453, %413 : vector<8x32xf32>
    %463 = arith.addf %461, %462 : vector<8x32xf32>
    %464 = vector.extract_strided_slice %99 {offsets = [56, 0], sizes = [8, 128], strides = [1, 1]} : vector<64x128xf32> to vector<8x128xf32>
    %465 = arith.truncf %437 : vector<8x32xf32> to vector<8x32xbf16>
    %cst_100 = arith.constant dense<0.000000e+00> : vector<8x128xf32>
    %466 = tpu.matmul %465, %100, %cst_100 {dimension_numbers = #tpu.dot_dimension_numbers<[1], [0], [0], [1], [0, 0, 1, 1], [], []>} : vector<8x32xbf16>, vector<32x128xbf16>, vector<8x128xf32> -> vector<8x128xf32>
    %467 = arith.addf %466, %105 : vector<8x128xf32>
    %468 = vector.extract_strided_slice %464 {offsets = [0, 0], sizes = [8, 64], strides = [1, 1]} : vector<8x128xf32> to vector<8x64xf32>
    %469 = vector.extract_strided_slice %467 {offsets = [0, 0], sizes = [8, 64], strides = [1, 1]} : vector<8x128xf32> to vector<8x64xf32>
    %470 = arith.addf %468, %469 : vector<8x64xf32>
    %471 = arith.negf %470 : vector<8x64xf32>
    %472 = math.exp %471 : vector<8x64xf32>
    %cst_101 = arith.constant 1.000000e+00 : f32
    %473 = vector.broadcast %cst_101 : f32 to vector<8x64xf32>
    %474 = arith.addf %473, %472 : vector<8x64xf32>
    %475 = arith.divf %473, %474 : vector<8x64xf32>
    %476 = vector.extract_strided_slice %475 {offsets = [0, 0], sizes = [8, 32], strides = [1, 1]} : vector<8x64xf32> to vector<8x32xf32>
    %477 = vector.extract_strided_slice %475 {offsets = [0, 32], sizes = [8, 32], strides = [1, 1]} : vector<8x64xf32> to vector<8x32xf32>
    %478 = vector.extract_strided_slice %464 {offsets = [0, 64], sizes = [8, 32], strides = [1, 1]} : vector<8x128xf32> to vector<8x32xf32>
    %479 = vector.extract_strided_slice %467 {offsets = [0, 64], sizes = [8, 32], strides = [1, 1]} : vector<8x128xf32> to vector<8x32xf32>
    %480 = arith.mulf %476, %479 : vector<8x32xf32>
    %481 = arith.addf %478, %480 : vector<8x32xf32>
    %482 = math.tanh %481 : vector<8x32xf32>
    %cst_102 = arith.constant 1.000000e+00 : f32
    %483 = vector.broadcast %cst_102 : f32 to vector<8x32xf32>
    %484 = arith.subf %483, %477 : vector<8x32xf32>
    %485 = arith.mulf %484, %482 : vector<8x32xf32>
    %486 = arith.mulf %477, %437 : vector<8x32xf32>
    %487 = arith.addf %485, %486 : vector<8x32xf32>
    %488 = arith.truncf %487 : vector<8x32xf32> to vector<8x32xbf16>
    %cst_103 = arith.constant dense<0.000000e+00> : vector<8x128xf32>
    %489 = tpu.matmul %488, %101, %cst_103 {dimension_numbers = #tpu.dot_dimension_numbers<[1], [0], [0], [1], [0, 0, 1, 1], [], []>} : vector<8x32xbf16>, vector<32x128xbf16>, vector<8x128xf32> -> vector<8x128xf32>
    %490 = arith.addf %489, %108 : vector<8x128xf32>
    %491 = arith.truncf %463 : vector<8x32xf32> to vector<8x32xbf16>
    %cst_104 = arith.constant dense<0.000000e+00> : vector<8x128xf32>
    %492 = tpu.matmul %491, %102, %cst_104 {dimension_numbers = #tpu.dot_dimension_numbers<[1], [0], [0], [1], [0, 0, 1, 1], [], []>} : vector<8x32xbf16>, vector<32x128xbf16>, vector<8x128xf32> -> vector<8x128xf32>
    %493 = arith.addf %492, %111 : vector<8x128xf32>
    %494 = vector.extract_strided_slice %490 {offsets = [0, 0], sizes = [8, 64], strides = [1, 1]} : vector<8x128xf32> to vector<8x64xf32>
    %495 = vector.extract_strided_slice %493 {offsets = [0, 0], sizes = [8, 64], strides = [1, 1]} : vector<8x128xf32> to vector<8x64xf32>
    %496 = arith.addf %494, %495 : vector<8x64xf32>
    %497 = arith.negf %496 : vector<8x64xf32>
    %498 = math.exp %497 : vector<8x64xf32>
    %cst_105 = arith.constant 1.000000e+00 : f32
    %499 = vector.broadcast %cst_105 : f32 to vector<8x64xf32>
    %500 = arith.addf %499, %498 : vector<8x64xf32>
    %501 = arith.divf %499, %500 : vector<8x64xf32>
    %502 = vector.extract_strided_slice %501 {offsets = [0, 0], sizes = [8, 32], strides = [1, 1]} : vector<8x64xf32> to vector<8x32xf32>
    %503 = vector.extract_strided_slice %501 {offsets = [0, 32], sizes = [8, 32], strides = [1, 1]} : vector<8x64xf32> to vector<8x32xf32>
    %504 = vector.extract_strided_slice %490 {offsets = [0, 64], sizes = [8, 32], strides = [1, 1]} : vector<8x128xf32> to vector<8x32xf32>
    %505 = vector.extract_strided_slice %493 {offsets = [0, 64], sizes = [8, 32], strides = [1, 1]} : vector<8x128xf32> to vector<8x32xf32>
    %506 = arith.mulf %502, %505 : vector<8x32xf32>
    %507 = arith.addf %504, %506 : vector<8x32xf32>
    %508 = math.tanh %507 : vector<8x32xf32>
    %cst_106 = arith.constant 1.000000e+00 : f32
    %509 = vector.broadcast %cst_106 : f32 to vector<8x32xf32>
    %510 = arith.subf %509, %503 : vector<8x32xf32>
    %511 = arith.mulf %510, %508 : vector<8x32xf32>
    %512 = arith.mulf %503, %463 : vector<8x32xf32>
    %513 = arith.addf %511, %512 : vector<8x32xf32>
    %cst_107 = arith.constant dense<0.000000e+00> : vector<8xf32>
    %514 = vector.multi_reduction <add>, %513, %cst_107 [1] : vector<8x32xf32> to vector<8xf32>
    %515 = vector.shape_cast %514 : vector<8xf32> to vector<8x1xf32>
    %cst_108 = arith.constant 3.200000e+01 : f32
    %516 = vector.broadcast %cst_108 : f32 to vector<8x1xf32>
    %517 = arith.divf %515, %516 : vector<8x1xf32>
    %518 = vector.broadcast %517 : vector<8x1xf32> to vector<8x32xf32>
    %519 = arith.subf %513, %518 : vector<8x32xf32>
    %520 = arith.mulf %519, %519 : vector<8x32xf32>
    %cst_109 = arith.constant dense<0.000000e+00> : vector<8xf32>
    %521 = vector.multi_reduction <add>, %520, %cst_109 [1] : vector<8x32xf32> to vector<8xf32>
    %522 = vector.shape_cast %521 : vector<8xf32> to vector<8x1xf32>
    %cst_110 = arith.constant 3.200000e+01 : f32
    %523 = vector.broadcast %cst_110 : f32 to vector<8x1xf32>
    %524 = arith.divf %522, %523 : vector<8x1xf32>
    %525 = vector.broadcast %517 : vector<8x1xf32> to vector<8x32xf32>
    %526 = arith.subf %513, %525 : vector<8x32xf32>
    %cst_111 = arith.constant 9.99999997E-7 : f32
    %527 = vector.broadcast %cst_111 : f32 to vector<8x1xf32>
    %528 = arith.addf %524, %527 : vector<8x1xf32>
    %529 = math.rsqrt %528 : vector<8x1xf32>
    %530 = vector.broadcast %529 : vector<8x1xf32> to vector<8x32xf32>
    %531 = arith.mulf %526, %530 : vector<8x32xf32>
    %c6 = arith.constant 6 : index
    %c0_112 = arith.constant 0 : index
    %532 = vector.load %arg3[%c6, %c0_112] : memref<10x128xf32, #tpu.memory_space<vmem>>, vector<1x32xf32>
    %533 = vector.broadcast %532 : vector<1x32xf32> to vector<8x32xf32>
    %534 = arith.mulf %531, %533 : vector<8x32xf32>
    %c7 = arith.constant 7 : index
    %c0_113 = arith.constant 0 : index
    %535 = vector.load %arg3[%c7, %c0_113] : memref<10x128xf32, #tpu.memory_space<vmem>>, vector<1x32xf32>
    %536 = vector.broadcast %535 : vector<1x32xf32> to vector<8x32xf32>
    %537 = arith.addf %534, %536 : vector<8x32xf32>
    %538 = vector.extract_strided_slice %92 {offsets = [0, 0], sizes = [8, 32], strides = [1, 1]} : vector<8x128xf32> to vector<8x32xf32>
    %c288 = arith.constant 288 : index
    %c0_114 = arith.constant 0 : index
    %539 = vector.load %arg2[%c288, %c0_114] : memref<448x128xbf16, #tpu.memory_space<vmem>>, vector<32x128xbf16>
    %540 = arith.truncf %538 : vector<8x32xf32> to vector<8x32xbf16>
    %cst_115 = arith.constant dense<0.000000e+00> : vector<8x128xf32>
    %541 = tpu.matmul %540, %539, %cst_115 {dimension_numbers = #tpu.dot_dimension_numbers<[1], [0], [0], [1], [0, 0, 1, 1], [], []>} : vector<8x32xbf16>, vector<32x128xbf16>, vector<8x128xf32> -> vector<8x128xf32>
    %c320 = arith.constant 320 : index
    %c0_116 = arith.constant 0 : index
    %542 = vector.load %arg2[%c320, %c0_116] : memref<448x128xbf16, #tpu.memory_space<vmem>>, vector<32x128xbf16>
    %543 = arith.truncf %537 : vector<8x32xf32> to vector<8x32xbf16>
    %cst_117 = arith.constant dense<0.000000e+00> : vector<8x128xf32>
    %544 = tpu.matmul %543, %542, %cst_117 {dimension_numbers = #tpu.dot_dimension_numbers<[1], [0], [0], [1], [0, 0, 1, 1], [], []>} : vector<8x32xbf16>, vector<32x128xbf16>, vector<8x128xf32> -> vector<8x128xf32>
    %545 = arith.addf %541, %544 : vector<8x128xf32>
    %c8 = arith.constant 8 : index
    %c0_118 = arith.constant 0 : index
    %546 = vector.load %arg3[%c8, %c0_118] : memref<10x128xf32, #tpu.memory_space<vmem>>, vector<1x128xf32>
    %547 = vector.broadcast %546 : vector<1x128xf32> to vector<8x128xf32>
    %548 = arith.addf %545, %547 : vector<8x128xf32>
    %cst_119 = arith.constant 5.000000e-01 : f32
    %549 = vector.broadcast %cst_119 : f32 to vector<8x128xf32>
    %550 = arith.mulf %549, %548 : vector<8x128xf32>
    %cst_120 = arith.constant 0.707106769 : f32
    %551 = vector.broadcast %cst_120 : f32 to vector<8x128xf32>
    %552 = arith.mulf %548, %551 : vector<8x128xf32>
    %cst_121 = arith.constant 0.000000e+00 : f32
    %553 = vector.broadcast %cst_121 : f32 to vector<8x128xf32>
    %554 = arith.cmpf oge, %552, %553 : vector<8x128xf32>
    %cst_122 = arith.constant 1.000000e+00 : f32
    %cst_123 = arith.constant -1.000000e+00 : f32
    %555 = vector.broadcast %cst_122 : f32 to vector<8x128xf32>
    %556 = vector.broadcast %cst_123 : f32 to vector<8x128xf32>
    %557 = arith.select %554, %555, %556 : vector<8x128xi1>, vector<8x128xf32>
    %558 = math.absf %552 : vector<8x128xf32>
    %cst_124 = arith.constant 0.327591091 : f32
    %559 = vector.broadcast %cst_124 : f32 to vector<8x128xf32>
    %560 = arith.mulf %559, %558 : vector<8x128xf32>
    %cst_125 = arith.constant 1.000000e+00 : f32
    %561 = vector.broadcast %cst_125 : f32 to vector<8x128xf32>
    %562 = arith.addf %561, %560 : vector<8x128xf32>
    %563 = tpu.reciprocal %562 {approx = true} : vector<8x128xf32> -> vector<8x128xf32>
    %cst_126 = arith.constant 1.06140542 : f32
    %564 = vector.broadcast %cst_126 : f32 to vector<8x128xf32>
    %565 = arith.mulf %564, %563 : vector<8x128xf32>
    %cst_127 = arith.constant -1.45315206 : f32
    %566 = vector.broadcast %cst_127 : f32 to vector<8x128xf32>
    %567 = arith.addf %565, %566 : vector<8x128xf32>
    %568 = arith.mulf %567, %563 : vector<8x128xf32>
    %cst_128 = arith.constant 1.42141378 : f32
    %569 = vector.broadcast %cst_128 : f32 to vector<8x128xf32>
    %570 = arith.addf %568, %569 : vector<8x128xf32>
    %571 = arith.mulf %570, %563 : vector<8x128xf32>
    %cst_129 = arith.constant -0.284496725 : f32
    %572 = vector.broadcast %cst_129 : f32 to vector<8x128xf32>
    %573 = arith.addf %571, %572 : vector<8x128xf32>
    %574 = arith.mulf %573, %563 : vector<8x128xf32>
    %cst_130 = arith.constant 0.254829586 : f32
    %575 = vector.broadcast %cst_130 : f32 to vector<8x128xf32>
    %576 = arith.addf %574, %575 : vector<8x128xf32>
    %577 = arith.mulf %576, %563 : vector<8x128xf32>
    %cst_131 = arith.constant 0.000000e+00 : f32
    %578 = vector.broadcast %cst_131 : f32 to vector<8x128xf32>
    %579 = arith.subf %578, %558 : vector<8x128xf32>
    %580 = arith.mulf %579, %558 : vector<8x128xf32>
    %581 = math.exp %580 : vector<8x128xf32>
    %582 = arith.mulf %577, %581 : vector<8x128xf32>
    %cst_132 = arith.constant 1.000000e+00 : f32
    %583 = vector.broadcast %cst_132 : f32 to vector<8x128xf32>
    %584 = arith.subf %583, %582 : vector<8x128xf32>
    %585 = arith.mulf %557, %584 : vector<8x128xf32>
    %cst_133 = arith.constant 1.000000e+00 : f32
    %586 = vector.broadcast %cst_133 : f32 to vector<8x128xf32>
    %587 = arith.addf %586, %585 : vector<8x128xf32>
    %588 = arith.mulf %550, %587 : vector<8x128xf32>
    %589 = vector.extract_strided_slice %588 {offsets = [0, 0], sizes = [8, 96], strides = [1, 1]} : vector<8x128xf32> to vector<8x96xf32>
    %c352 = arith.constant 352 : index
    %c0_134 = arith.constant 0 : index
    %590 = vector.load %arg2[%c352, %c0_134] : memref<448x128xbf16, #tpu.memory_space<vmem>>, vector<96x128xbf16>
    %591 = arith.truncf %589 : vector<8x96xf32> to vector<8x96xbf16>
    %cst_135 = arith.constant dense<0.000000e+00> : vector<8x128xf32>
    %592 = tpu.matmul %591, %590, %cst_135 {dimension_numbers = #tpu.dot_dimension_numbers<[1], [0], [0], [1], [0, 0, 1, 1], [], []>} : vector<8x96xbf16>, vector<96x128xbf16>, vector<8x128xf32> -> vector<8x128xf32>
    %c9 = arith.constant 9 : index
    %c0_136 = arith.constant 0 : index
    %593 = vector.load %arg3[%c9, %c0_136] : memref<10x128xf32, #tpu.memory_space<vmem>>, vector<1x128xf32>
    %594 = vector.broadcast %593 : vector<1x128xf32> to vector<8x128xf32>
    %595 = arith.addf %592, %594 : vector<8x128xf32>
    %c0_137 = arith.constant 0 : index
    %c0_138 = arith.constant 0 : index
    %596 = vector.load %arg4[%c0_137, %c0_138] : memref<8x128xf32, #tpu.memory_space<vmem>>, vector<8x128xf32>
    tpu.vector_store %arg4[%c0_137, %c0_138], %595 {strides = array<i32>} : memref<8x128xf32, #tpu.memory_space<vmem>>, vector<8x128xf32>,
    return
  }
}

</mosaic_0001>

<bundles_post_ra>
// kernel: reward_shaping_forward.1
= control target key start
LH: loop header
LB: loop body
LE: loop exit
PB: predicated region body
PF: predicated region fallthrough
CT: control target
= control target key end

     0   :  { %9 = vsyncpa [#allocation3], 0  ;;  %s2848_s15 = smov [#allocation2]   ;;  %s3386_s0 = inlined_call_operand.vmem [shape: f32[8,32], index: 0, kind: input, shape index: {}]   ;;  %s3387_s1 = inlined_call_operand.vmem [shape: f32[64,32], index: 1, kind: input, shape index: {}]   ;;  %s3388_s2 = inlined_call_operand.hbm [shape: bf16[448,128], index: 2, kind: input, shape index: {}]   ;;  %s3389_s3 = inlined_call_operand.vmem [shape: f32[10,128], index: 3, kind: input, shape index: {}]   ;;  %s3390_s4 = inlined_call_operand.vmem [shape: f32[8,128], index: 4, kind: output, shape index: {}]  }
   0x1   :  { %s19_s16 = sshll.u32 %s2848_s15, 4  ;;  %s2824_s19 = scalar_lea.hbm %s3388_s2, 3584  ;;  %s20_s16 = int_to_ptr.vmem [resolvable:$true] %s19_s16 }
   0x2   :  { %p2825_p0 = scmp.ne.s32.totalorder %s3388_s2, %s2824_s19  ;;  %p2828_p1 = scmp.lt.u32.totalorder %s2824_s19, %s3388_s2 }
   0x4   :  { %p2830_p2 = pnand %p2828_p1, %p2825_p0 }
   0x6   :  { %2833 = shalt.err (!%p2830_p2)
}
   0x7   :  { %s2834_s24 = scalar_lea.vmem %s20_s16, 3584  ;;  %p2839_p4 = scmp.lt.s32.totalorder %s20_s16, %s20_s16 }
   0x8   :  { %p2835_p3 = scmp.ne.s32.totalorder %s20_s16, %s2834_s24  ;;  %p2840_p5 = scmp.lt.s32.totalorder %s2834_s24, %s2834_s24 }
   0xa   :  { %p2841_p6 = por %p2840_p5, %p2839_p4 }
   0xc   :  { %p2842_p7 = pnand %p2841_p6, %p2835_p3 }
   0xe   :  { %2845 = shalt.err (!%p2842_p7)
}
   0xf   :  { %s2849_s25 = smov 64   ;;  %s2850_s26 = smov 4  }
  0x10   :  { %25 = dma.hbm_to_vmem [thread:$0]  %s3388_s2, 3584, %s20_s16, [#allocation3], %s2849_s25, %s2849_s25, %s2850_s26  }
  0x11   :  { %2846 = dma.done.wait [#allocation3], 3584  }
  0x12   :  { %2847 = vsyncadd [#allocation3], 4294963712  ;;  %v2851_v0 = vmov 0.0   ;;  %vm2852_vm0 = vmmov 0   ;;  %v2679_v1 = vld [vmem:[#allocation2] sm:$0xff]   ;;  %v2680_v2 = vld [vmem:[#allocation2 + $0x8] sm:$0xff]  }
  0x13   :  { %2406 = vmatprep.subr.bf16.mxu0 %v2851_v0  ;;  %2410 = vmatprep.mubr.msk.bf16.mxu0 %vm2852_vm0, %v2851_v0  ;;  %v32_v3 = vld [vmem:[%s3386_s0] sm:$0xff]  ;;  %v2681_v4 = vld [vmem:[#allocation2 + $0x50] sm:$0xff]   ;;  %v262_v6 = vld [vmem:[%s3387_s1 + $0x8] sm:$0xff]  ;;  %vm55_vm1 = vcmask 261120   ;;  %v2853_v21 = vmov 0   ;;  %s2855_s24 = smov 96  }
  0x14   :  { %2414 = vmatprep.subr.bf16.mxu1 %v2851_v0  ;;  %2430 = vmatprep.mubr.msk.bf16.mxu1 %vm2852_vm0, %v2851_v0  ;;  %v261_v5 = vld [vmem:[%s3387_s1] sm:$0xff]  ;;  %v37_v7 = vpack.c.bf16 %v32_v3, %v32_v3  ;;  %v2682_v9 = vld [vmem:[#allocation2 + $0x58] sm:$0xff]   ;;  %v263_v10 = vld [vmem:[%s3387_s1 + $0x10] sm:$0xff]  ;;  %s2856_s11 = smov 32   ;;  %vm2169_vm5 = vcmask 785408  }
  0x15   :  { %2407 = vmatpush3.bf16.msra.mxu0 %v2679_v1  ;;  %v273_v8 = vpack.c.bf16 %v262_v6, %v261_v5  ;;  %v264_v11 = vld [vmem:[%s3387_s1 + $0x18] sm:$0xff]  ;;  %v265_v12 = vld [vmem:[%s3387_s1 + $0x20] sm:$0xff]  ;;  %v266_v13 = vld [vmem:[%s3387_s1 + $0x28] sm:$0xff] }
  0x16   :  { %2408 = vmatprep.subr.bf16.mxu0 %v2851_v0  ;;  %v2926_v14 = vld [vmem:[#allocation2 + $0x60] sm:$0xff]   ;;  %v274_v15 = vpack.c.bf16 %v264_v11, %v263_v10  ;;  %v275_v16 = vpack.c.bf16 %v266_v13, %v265_v12  ;;  %v267_v17 = vld [vmem:[%s3387_s1 + $0x30] sm:$0xff]  ;;  %v268_v18 = vld [vmem:[%s3387_s1 + $0x38] sm:$0xff] }
  0x17   :  { %v2935_v19 = vld [vmem:[#allocation2 + $0x68] sm:$0xff]   ;;  %v276_v20 = vpack.c.bf16 %v268_v18, %v267_v17  ;;  %v2685_v22 = vld [vmem:[#allocation2 + $0x10] sm:$0xff]   ;;  %v2686_v23 = vld [vmem:[#allocation2 + $0x18] sm:$0xff]  }
  0x18   :  { %2415 = vmatpush3.bf16.msra.mxu1 %v2685_v22  ;;  %v2687_v24 = vld [vmem:[#allocation2 + $0x20] sm:$0xff]   ;;  %v2688_v25 = vld [vmem:[#allocation2 + $0x28] sm:$0xff]   ;;  %v2689_v26 = vld [vmem:[#allocation2 + $0x30] sm:$0xff]  }
  0x19   :  { %2409 = vmatpush3.bf16.msra.mxu0 %v2680_v2  ;;  %2416 = vmatprep.subr.bf16.mxu1 %v2851_v0  ;;  %v2690_v27 = vld [vmem:[#allocation2 + $0x38] sm:$0xff]   ;;  %v2691_v28 = vld [vmem:[#allocation2 + $0x40] sm:$0xff]   ;;  %v2692_v29 = vld [vmem:[#allocation2 + $0x48] sm:$0xff]  }
  0x1a   :  { %2434 = vmatprep.subr.bf16.mxu0 %v2681_v4  ;;  %v2219_v30 = vld [vmem:[%s3389_s3] ss:$0 sm:$0xff]  ;;  %v2232_v38 = vld [vmem:[%s3389_s3 + $0x2] ss:$0 sm:$0xff]  ;;  %v2980_v60 = vld [vmem:[%s3389_s3 + $0x3] ss:$0 sm:$0xff] }
  0x1c   :  { %2411 = vmatmul.mubr.msk.bf16.vlgmr.msra.gmra.mrb[0].mxu0 %vm55_vm1, %v37_v7  ;;  %2417 = vmatpush3.bf16.msra.mxu1 %v2686_v23 }
  0x1d   :  { %2435 = vmatpush3.bf16.msra.mxu0 %v2681_v4  ;;  %2438 = vmatprep.mubr.msk.bf16.mxu0 %vm55_vm1, %v273_v8 }
  0x1e   :  { %2436 = vmatprep.subr.bf16.mxu0 %v2682_v9  ;;  %2418 = vmatprep.subr.bf16.mxu1 %v2851_v0 }
  0x20   :  { %2419 = vmatpush3.bf16.msra.mxu1 %v2687_v24 }
  0x21   :  { %2437 = vmatpush3.bf16.msra.mxu0 %v2682_v9  ;;  %2420 = vmatprep.subr.bf16.mxu1 %v2851_v0 }
  0x22   :  { %2446 = vmatprep.subr.bf16.mxu0 %v2851_v0 }
  0x24   :  { %2439 = vmatmul.mubr.msk.bf16.vlgmr.msra.gmra.mrb[4].mxu0 %vm55_vm1, %v274_v15  ;;  %2421 = vmatpush3.bf16.msra.mxu1 %v2688_v25 }
  0x25   :  { %2447 = vmatpush3.bf16.msra.mxu0 %v2926_v14  ;;  %2442 = vmatprep.mubr.msk.bf16.mxu0 %vm55_vm1, %v275_v16  ;;  %v2854_v16 = vmov -1.0  }
  0x26   :  { %2448 = vmatprep.subr.bf16.mxu0 %v2851_v0  ;;  %2422 = vmatprep.subr.bf16.mxu1 %v2851_v0 }
  0x28   :  { %2423 = vmatpush3.bf16.msra.mxu1 %v2689_v26 }
  0x29   :  { %2449 = vmatpush3.bf16.msra.mxu0 %v2935_v19  ;;  %2424 = vmatprep.subr.bf16.mxu1 %v2851_v0 }
  0x2a   :  { %2454 = vmatprep.subr.bf16.mxu0 %v2851_v0 }
  0x2c   :  { %2443 = vmatmul.mubr.msk.bf16.gmra.mrb[8].mxu0 %vm55_vm1, %v276_v20  ;;  %2425 = vmatpush3.bf16.msra.mxu1 %v2690_v27 }
  0x2d   :  { %2450 = vmatprep.mubr.msk.bf16.mxu0 %vm2852_vm0, %v2851_v0  ;;  %2426 = vmatprep.subr.bf16.mxu1 %v2851_v0 }
  0x30   :  { %2427 = vmatpush3.bf16.msra.mxu1 %v2691_v28 }
  0x31   :  { %2428 = vmatprep.subr.bf16.mxu1 %v2851_v0 }
  0x34   :  { %2451 = vmatmul.mubr.bf16.vlgmr.msra.gmra.mrb[12].mxu0 %v2853_v21  ;;  %2429 = vmatpush3.bf16.msra.mxu1 %v2692_v29 }
  0x35   :  { %2458 = vmatprep.mubr.msk.bf16.mxu0 %vm2852_vm0, %v2851_v0  ;;  %2478 = vmatprep.subr.bf16.mxu1 %v2851_v0 }
  0xef   :  { %v93_v31 = vpop.f32.mrb[0].mxu0 }
  0xf0   :  { %v94_v32 = vadd.f32 %v2219_v30, %v93_v31  ;;  %v2412_v33 = vpop.f32.mrb[1].mxu0 }
  0xf1   :  { %v96_v34 = vpop.f32.mrb[2].mxu0 }
  0xf2   :  { %v100_v35 = vmul.f32 0.70710677, %v94_v32  ;;  %v2413_v36 = vpop.f32.mrb[3].mxu0  ;;  %v99_v20 = vmul.f32 0.5, %v94_v32 }
  0xf4   :  { %v103_v37 = vand.u32 2147483647, %v100_v35  ;;  %vm101_vm2 = vcmp.ge.f32.partialorder %v100_v35, 0.0 }
  0xf5   :  { %v102_v17 = vsel %vm101_vm2, 1.0, %v2854_v16 }
  0xf6   :  { %v104_v39 = vmul.f32 0.3275911, %v103_v37  ;;  %v116_v49 = vsub.f32 0.0, %v103_v37 }
  0xf7   :  { %v2440_v40 = vpop.f32.mrb[4].mxu0 }
  0xf8   :  { %v105_v41 = vadd.f32 1.0, %v104_v39  ;;  %v2963_v42 = vadd.f32 %v2440_v40, %v2232_v38  ;;  %v340_v43 = vpop.f32.mrb[5].mxu0  ;;  %v117_v58 = vmul.f32 %v116_v49, %v103_v37  ;;  %v2990_v39 = vld [vmem:[#allocation2 + $0x70] sm:$0xff]   ;;  %v2993_v40 = vld [vmem:[#allocation2 + $0x78] sm:$0xff]  }
  0xf9   :  { %v2441_v44 = vpop.f32.mrb[6].mxu0  ;;  %v341_v25 = vadd.f32 %v2232_v38, %v340_v43  ;;  %2455 = vmatpush3.bf16.msra.mxu0 %v2990_v39 }
  0xfa   :  { %2707 = vrcp.f32 %v105_v41  ;;  %v2965_v45 = vadd.f32 %v2441_v44, %v2232_v38  ;;  %v343_v46 = vpop.f32.mrb[7].mxu0  ;;  %v118_v63 = vmul.f32 1.442695, %v117_v58  ;;  %2456 = vmatprep.subr.bf16.mxu0 %v2851_v0 }
  0xfb   :  { %v2967_v47 = vadd.f32 %v2232_v38, %v343_v46 }
  0xfc   :  { %2709 = vpow2.f32 %v118_v63 }
  0xfd   :  { %2457 = vmatpush3.bf16.msra.mxu0 %v2993_v40 }
  0xfe   :  { %2462 = vmatprep.subr.bf16.mxu0 %v2851_v0 }
  0xff   :  { %v2444_v48 = vpop.f32.mrb[8].mxu0 }
 0x100   :  { %v2969_v50 = vadd.f32 %v2444_v48, %v2232_v38  ;;  %v356_v51 = vpop.f32.mrb[9].mxu0 }
 0x101   :  { %v2971_v52 = vadd.f32 %v2232_v38, %v356_v51  ;;  %v2445_v53 = vpop.f32.mrb[10].mxu0 }
 0x102   :  { %v2973_v54 = vadd.f32 %v2445_v53, %v2232_v38  ;;  %v359_v55 = vpop.f32.mrb[11].mxu0  ;;  %v3008_v53 = vld [vmem:[#allocation2 + $0x80] sm:$0xff]  }
 0x103   :  { %v2975_v56 = vadd.f32 %v2232_v38, %v359_v55 }
 0x104   :  { %v2708_v57 = vpop.eup %2707 }
 0x105   :  { %v107_v59 = vmul.f32 1.0614054, %v2708_v57 }
 0x106   :  { %v2710_v12 = vpop.eup %2709 }
 0x107   :  { %v108_v61 = vadd.f32 -1.4531521, %v107_v59  ;;  %v447_v62 = vpop.f32.mrb[12].mxu0 }
 0x108   :  { %v448_v1 = vadd.f32 %v2980_v60, %v447_v62  ;;  %v2452_v2 = vpop.f32.mrb[13].mxu0  ;;  %v3036_v62 = vld [vmem:[%s3389_s3 + $0x5] ss:$0 sm:$0xff] }
 0x109   :  { %v109_v3 = vmul.f32 %v2708_v57, %v108_v61  ;;  %v450_v4 = vpop.f32.mrb[14].mxu0 }
 0x10a   :  { %461 = vrot.lane.b32.xlu0 %v448_v1, %s2849_s25  ;;  %v2453_v5 = vpop.f32.mrb[15].mxu0  ;;  %v453_v26 = vadd.f32 %v448_v1, %v341_v25 }
 0x10b   :  { %v110_v6 = vadd.f32 1.4214138, %v109_v3 }
 0x10c   :  { %v2244_v27 = vmul.f32 -1.442695, %v453_v26 }
 0x10d   :  { %v111_v7 = vmul.f32 %v2708_v57, %v110_v6 }
 0x10e   :  { %2711 = vpow2.f32 %v2244_v27 }
 0x10f   :  { %v112_v8 = vadd.f32 -0.28449672, %v111_v7 }
 0x111   :  { %v113_v9 = vmul.f32 %v2708_v57, %v112_v8 }
 0x113   :  { %v114_v10 = vadd.f32 0.2548296, %v113_v9 }
 0x115   :  { %v115_v11 = vmul.f32 %v2708_v57, %v114_v10  ;;  %v3012_v57 = vld [vmem:[#allocation2 + $0x88] sm:$0xff]   ;;  %v3045_v10 = vld [vmem:[%s3389_s3 + $0x4] ss:$0 sm:$0xff] }
 0x117   :  { %v120_v13 = vmul.f32 %v2710_v12, %v115_v11 }
 0x118   :  { %v2712_v28 = vpop.eup %2711 }
 0x119   :  { %v121_v15 = vsub.f32 1.0, %v120_v13  ;;  %v457_v29 = vadd.f32 1.0, %v2712_v28 }
 0x11b   :  { %v122_v18 = vmul.f32 %v121_v15, %v102_v17  ;;  %2713 = vrcp.f32 %v457_v29 }
 0x11d   :  { %v123_v22 = vadd.f32 1.0, %v122_v18 }
 0x11f   :  { %v124_v23 = vmul.f32 %v123_v22, %v99_v20 }
 0x121   :  { %v141_v24 = vpack.c.bf16 %v124_v23, %v124_v23 }
 0x123   :  { %2431 = vmatmul.mubr.bf16.vlgmr.msra.gmra.mrb[0].mxu1 %v141_v24 }
 0x124   :  { %2482 = vmatprep.mubr.msk.bf16.mxu1 %vm2852_vm0, %v2851_v0  ;;  %2479 = vmatpush3.bf16.msra.mxu1 %v2990_v39 }
 0x125   :  { %v2714_v30 = vpop.eup %2713  ;;  %2480 = vmatprep.subr.bf16.mxu1 %v2851_v0 }
 0x126   :  { %v471_v43 = vsub.f32 1.0, %v2714_v30  ;;  %v477_v46 = vmul.f32 0.0, %v2714_v30 }
 0x128   :  { %2481 = vmatpush3.bf16.msra.mxu1 %v2993_v40 }
 0x129   :  { %2494 = vmatprep.subr.bf16.mxu1 %v2851_v0 }
 0x17c   :  { %v462_v31 = vpop.permute.xlu0 %461 }
 0x17d   :  { %v464_v33 = vmul.f32 %v2714_v30, %v462_v31 }
 0x17f   :  { %466 = vrot.lane.b32.xlu0 %v464_v33, %s2849_s25 }
 0x1f1   :  { %v467_v32 = vpop.permute.xlu0 %466 }
 0x1f2   :  { %v469_v34 = vadd.f32 %v467_v32, %v341_v25 }
 0x1f4   :  { %2715 = vtanh.f32 %v469_v34 }
 0x1f6   :  { %v2988_v35 = vpop.f32.mrb[0].mxu1 }
 0x1f7   :  { %v2432_v36 = vpop.f32.mrb[1].mxu1 }
 0x1f8   :  { %v232_v37 = vpop.f32.mrb[2].mxu1 }
 0x1f9   :  { %v2433_v38 = vpop.f32.mrb[3].mxu1 }
 0x1fe   :  { %v2716_v41 = vpop.eup %2715 }
 0x1ff   :  { %473 = vrot.lane.b32.xlu1 %v2716_v41, %s2855_s24 }
 0x271   :  { %v474_v44 = vpop.permute.xlu1 %473 }
 0x272   :  { %v476_v48 = vmul.f32 %v474_v44, %v471_v43 }
 0x274   :  { %v3003_v49 = vadd.f32 %v477_v46, %v476_v48 }
 0x276   :  { %v479_v51 = vpack.c.bf16 %v3003_v49, %v3003_v49 }
 0x278   :  { %481 = vrot.lane.b32.xlu1 %v479_v51, %s2855_s24 }
 0x2ea   :  { %v482_v55 = vpop.permute.xlu1 %481 }
 0x2eb   :  { %2459 = vmatmul.mubr.msk.bf16.vlgmr.msra.gmra.mrb[16].mxu0 %vm55_vm1, %v482_v55 }
 0x2ec   :  { %2463 = vmatpush3.bf16.msra.mxu0 %v3008_v53  ;;  %2466 = vmatprep.mubr.msk.bf16.mxu0 %vm2852_vm0, %v2851_v0 }
 0x2ed   :  { %2464 = vmatprep.subr.bf16.mxu0 %v2851_v0 }
 0x2f0   :  { %2465 = vmatpush3.bf16.msra.mxu0 %v3012_v57 }
 0x2f1   :  { %2470 = vmatprep.subr.bf16.mxu0 %v2851_v0 }
 0x2f3   :  { %2467 = vmatmul.mubr.bf16.vlgmr.msra.gmra.mrb[20].mxu0 %v2853_v21 }
 0x2f4   :  { %2471 = vmatpush3.bf16.msra.mxu0 %v2926_v14  ;;  %2474 = vmatprep.mubr.msk.bf16.mxu0 %vm2852_vm0, %v2851_v0 }
 0x2f5   :  { %2472 = vmatprep.subr.bf16.mxu0 %v2851_v0 }
 0x2f8   :  { %2473 = vmatpush3.bf16.msra.mxu0 %v2935_v19 }
 0x2f9   :  { %2486 = vmatprep.subr.bf16.mxu0 %v2851_v0 }
 0x2fb   :  { %2475 = vmatmul.mubr.msk.bf16.vlgmr.msra.gmra.mrb[24].mxu0 %vm55_vm1, %v482_v55 }
 0x2fc   :  { %2487 = vmatpush3.bf16.msra.mxu0 %v3008_v53  ;;  %2490 = vmatprep.mubr.msk.bf16.mxu0 %vm2852_vm0, %v2851_v0 }
 0x2fd   :  { %2488 = vmatprep.subr.bf16.mxu0 %v2851_v0 }
 0x300   :  { %2489 = vmatpush3.bf16.msra.mxu0 %v3012_v57 }
 0x301   :  { %2502 = vmatprep.subr.bf16.mxu0 %v2851_v0 }
 0x3be   :  { %v532_v21 = vpop.f32.mrb[16].mxu0 }
 0x3bf   :  { %v2460_v58 = vpop.f32.mrb[17].mxu0  ;;  %v533_v11 = vadd.f32 %v3045_v10, %v532_v21 }
 0x3c0   :  { %v535_v59 = vpop.f32.mrb[18].mxu0 }
 0x3c1   :  { %v2461_v61 = vpop.f32.mrb[19].mxu0 }
 0x3c6   :  { %v584_v63 = vpop.f32.mrb[20].mxu0 }
 0x3c7   :  { %v585_v1 = vadd.f32 %v3036_v62, %v584_v63  ;;  %v2468_v2 = vpop.f32.mrb[21].mxu0 }
 0x3c8   :  { %v587_v3 = vpop.f32.mrb[22].mxu0 }
 0x3c9   :  { %598 = vrot.lane.b32.xlu1 %v585_v1, %s2849_s25  ;;  %v2469_v4 = vpop.f32.mrb[23].mxu0  ;;  %v590_v12 = vadd.f32 %v585_v1, %v533_v11 }
 0x3cb   :  { %v2250_v13 = vmul.f32 -1.442695, %v590_v12 }
 0x3cd   :  { %2717 = vpow2.f32 %v2250_v13 }
 0x3ce   :  { %v650_v5 = vpop.f32.mrb[24].mxu0 }
 0x3cf   :  { %v651_v6 = vadd.f32 %v2980_v60, %v650_v5  ;;  %v2476_v7 = vpop.f32.mrb[25].mxu0 }
 0x3d0   :  { %v653_v8 = vpop.f32.mrb[26].mxu0 }
 0x3d1   :  { %664 = vrot.lane.b32.xlu0 %v651_v6, %s2849_s25  ;;  %v2477_v9 = vpop.f32.mrb[27].mxu0  ;;  %v656_v15 = vadd.f32 %v651_v6, %v2967_v47 }
 0x3d3   :  { %v2252_v17 = vmul.f32 -1.442695, %v656_v15 }
 0x3d5   :  { %2719 = vpow2.f32 %v2252_v17 }
 0x3d7   :  { %v2718_v18 = vpop.eup %2717 }
 0x3d8   :  { %v594_v20 = vadd.f32 1.0, %v2718_v18 }
 0x3da   :  { %2721 = vrcp.f32 %v594_v20 }
 0x3df   :  { %v2720_v22 = vpop.eup %2719 }
 0x3e0   :  { %v660_v23 = vadd.f32 1.0, %v2720_v22 }
 0x3e2   :  { %2723 = vrcp.f32 %v660_v23 }
 0x3e4   :  { %v2722_v24 = vpop.eup %2721 }
 0x3e5   :  { %v608_v37 = vsub.f32 1.0, %v2722_v24  ;;  %v614_v41 = vmul.f32 0.0, %v2722_v24 }
 0x3ec   :  { %v2724_v27 = vpop.eup %2723 }
 0x3ed   :  { %v674_v48 = vsub.f32 1.0, %v2724_v27  ;;  %v680_v51 = vmul.f32 %v2724_v27, %v3003_v49 }
 0x43b   :  { %v599_v25 = vpop.permute.xlu1 %598 }
 0x43c   :  { %v601_v26 = vmul.f32 %v2722_v24, %v599_v25 }
 0x43e   :  { %603 = vrot.lane.b32.xlu1 %v601_v26, %s2849_s25 }
 0x443   :  { %v665_v28 = vpop.permute.xlu0 %664 }
 0x444   :  { %v667_v29 = vmul.f32 %v2724_v27, %v665_v28 }
 0x446   :  { %669 = vrot.lane.b32.xlu0 %v667_v29, %s2849_s25 }
 0x4b0   :  { %v604_v30 = vpop.permute.xlu1 %603 }
 0x4b1   :  { %v606_v31 = vadd.f32 %v604_v30, %v533_v11 }
 0x4b3   :  { %2725 = vtanh.f32 %v606_v31 }
 0x4b8   :  { %v670_v33 = vpop.permute.xlu0 %669 }
 0x4b9   :  { %v672_v32 = vadd.f32 %v670_v33, %v2967_v47 }
 0x4bb   :  { %2727 = vtanh.f32 %v672_v32 }
 0x4bd   :  { %v2726_v34 = vpop.eup %2725 }
 0x4be   :  { %610 = vrot.lane.b32.xlu1 %v2726_v34, %s2855_s24 }
 0x4c5   :  { %v2728_v36 = vpop.eup %2727 }
 0x4c6   :  { %676 = vrot.lane.b32.xlu0 %v2728_v36, %s2855_s24 }
 0x530   :  { %v611_v38 = vpop.permute.xlu1 %610 }
 0x531   :  { %v613_v43 = vmul.f32 %v611_v38, %v608_v37 }
 0x533   :  { %v3054_v44 = vadd.f32 %v614_v41, %v613_v43 }
 0x535   :  { %v729_v46 = vpack.c.bf16 %v3054_v44, %v3054_v44 }
 0x537   :  { %731 = vrot.lane.b32.xlu1 %v729_v46, %s2855_s24 }
 0x538   :  { %v677_v47 = vpop.permute.xlu0 %676 }
 0x539   :  { %v679_v55 = vmul.f32 %v677_v47, %v674_v48 }
 0x53b   :  { %v3060_v21 = vadd.f32 %v680_v51, %v679_v55 }
 0x53d   :  { %v682_v58 = vpack.c.bf16 %v3060_v21, %v3060_v21 }
 0x53f   :  { %684 = vrot.lane.b32.xlu0 %v682_v58, %s2855_s24 }
 0x5a9   :  { %v732_v59 = vpop.permute.xlu1 %731 }
 0x5aa   :  { %2491 = vmatmul.mubr.msk.bf16.vlgmr.msra.gmra.mrb[28].mxu0 %vm55_vm1, %v732_v59 }
 0x5ab   :  { %2503 = vmatpush3.bf16.msra.mxu0 %v2990_v39  ;;  %2506 = vmatprep.mubr.msk.bf16.mxu0 %vm2852_vm0, %v2851_v0 }
 0x5ac   :  { %2504 = vmatprep.subr.bf16.mxu0 %v2851_v0 }
 0x5af   :  { %2505 = vmatpush3.bf16.msra.mxu0 %v2993_v40 }
 0x5b0   :  { %2518 = vmatprep.subr.bf16.mxu0 %v2851_v0 }
 0x5b1   :  { %v685_v49 = vpop.permute.xlu0 %684 }
 0x5b2   :  { %2483 = vmatmul.mubr.msk.bf16.vlgmr.msra.gmra.mrb[4].mxu1 %vm55_vm1, %v685_v49 }
 0x5b3   :  { %2495 = vmatpush3.bf16.msra.mxu1 %v2926_v14  ;;  %2498 = vmatprep.mubr.msk.bf16.mxu1 %vm2852_vm0, %v2851_v0 }
 0x5b4   :  { %2496 = vmatprep.subr.bf16.mxu1 %v2851_v0 }
 0x5b7   :  { %2497 = vmatpush3.bf16.msra.mxu1 %v2935_v19 }
 0x5b8   :  { %2510 = vmatprep.subr.bf16.mxu1 %v2851_v0 }
 0x5ba   :  { %2499 = vmatmul.mubr.msk.bf16.vlgmr.msra.gmra.mrb[8].mxu1 %vm55_vm1, %v685_v49 }
 0x5bb   :  { %2511 = vmatpush3.bf16.msra.mxu1 %v3008_v53  ;;  %2514 = vmatprep.mubr.msk.bf16.mxu1 %vm2852_vm0, %v2851_v0 }
 0x5bc   :  { %2512 = vmatprep.subr.bf16.mxu1 %v2851_v0 }
 0x5bf   :  { %2513 = vmatpush3.bf16.msra.mxu1 %v3012_v57 }
 0x5c0   :  { %2526 = vmatprep.subr.bf16.mxu1 %v2851_v0 }
 0x67d   :  { %v770_v61 = vpop.f32.mrb[28].mxu0 }
 0x67e   :  { %v771_v63 = vadd.f32 %v3036_v62, %v770_v61  ;;  %v2492_v1 = vpop.f32.mrb[29].mxu0 }
 0x67f   :  { %v773_v2 = vpop.f32.mrb[30].mxu0 }
 0x680   :  { %784 = vrot.lane.b32.xlu1 %v771_v63, %s2849_s25  ;;  %v2493_v3 = vpop.f32.mrb[31].mxu0 }
 0x685   :  { %v723_v4 = vpop.f32.mrb[4].mxu1 }
 0x686   :  { %v2484_v5 = vpop.f32.mrb[5].mxu1  ;;  %v724_v15 = vadd.f32 %v3045_v10, %v723_v4 }
 0x687   :  { %v726_v6 = vpop.f32.mrb[6].mxu1 }
 0x688   :  { %v2485_v7 = vpop.f32.mrb[7].mxu1  ;;  %v776_v17 = vadd.f32 %v771_v63, %v724_v15 }
 0x68a   :  { %v2255_v18 = vmul.f32 -1.442695, %v776_v17 }
 0x68c   :  { %2729 = vpow2.f32 %v2255_v18 }
 0x68d   :  { %v836_v8 = vpop.f32.mrb[8].mxu1 }
 0x68e   :  { %v837_v9 = vadd.f32 %v2980_v60, %v836_v8  ;;  %v2500_v11 = vpop.f32.mrb[9].mxu1 }
 0x68f   :  { %v839_v12 = vpop.f32.mrb[10].mxu1 }
 0x690   :  { %850 = vrot.lane.b32.xlu0 %v837_v9, %s2849_s25  ;;  %v2501_v13 = vpop.f32.mrb[11].mxu1  ;;  %v842_v20 = vadd.f32 %v837_v9, %v2963_v42 }
 0x692   :  { %v2257_v23 = vmul.f32 -1.442695, %v842_v20 }
 0x694   :  { %2731 = vpow2.f32 %v2257_v23 }
 0x696   :  { %v2730_v22 = vpop.eup %2729 }
 0x697   :  { %v780_v24 = vadd.f32 1.0, %v2730_v22 }
 0x699   :  { %2733 = vrcp.f32 %v780_v24 }
 0x69e   :  { %v2732_v25 = vpop.eup %2731 }
 0x69f   :  { %v846_v29 = vadd.f32 1.0, %v2732_v25 }
 0x6a1   :  { %2735 = vrcp.f32 %v846_v29 }
 0x6a3   :  { %v2734_v26 = vpop.eup %2733 }
 0x6a4   :  { %v794_v43 = vsub.f32 1.0, %v2734_v26  ;;  %v800_v48 = vmul.f32 %v2734_v26, %v3054_v44 }
 0x6ab   :  { %v2736_v30 = vpop.eup %2735 }
 0x6ac   :  { %v860_v58 = vsub.f32 1.0, %v2736_v30 }
 0x6f2   :  { %v785_v27 = vpop.permute.xlu1 %784 }
 0x6f3   :  { %v787_v28 = vmul.f32 %v2734_v26, %v785_v27 }
 0x6f5   :  { %789 = vrot.lane.b32.xlu1 %v787_v28, %s2849_s25 }
 0x702   :  { %v851_v31 = vpop.permute.xlu0 %850 }
 0x703   :  { %v853_v33 = vmul.f32 %v2736_v30, %v851_v31 }
 0x705   :  { %855 = vrot.lane.b32.xlu0 %v853_v33, %s2849_s25 }
 0x767   :  { %v790_v32 = vpop.permute.xlu1 %789 }
 0x768   :  { %v792_v34 = vadd.f32 %v790_v32, %v724_v15 }
 0x76a   :  { %2737 = vtanh.f32 %v792_v34 }
 0x774   :  { %v2738_v36 = vpop.eup %2737 }
 0x775   :  { %796 = vrot.lane.b32.xlu1 %v2738_v36, %s2855_s24 }
 0x777   :  { %v856_v37 = vpop.permute.xlu0 %855 }
 0x778   :  { %v858_v38 = vadd.f32 %v856_v37, %v2963_v42  ;;  %v866_v42 = vmul.f32 %v2736_v30, %v3060_v21 }
 0x77a   :  { %2739 = vtanh.f32 %v858_v38 }
 0x784   :  { %v2740_v41 = vpop.eup %2739 }
 0x785   :  { %862 = vrot.lane.b32.xlu0 %v2740_v41, %s2855_s24 }
 0x7e7   :  { %v797_v46 = vpop.permute.xlu1 %796 }
 0x7e8   :  { %v799_v47 = vmul.f32 %v797_v46, %v794_v43 }
 0x7ea   :  { %v3098_v51 = vadd.f32 %v800_v48, %v799_v47 }
 0x7ec   :  { %v915_v55 = vpack.c.bf16 %v3098_v51, %v3098_v51 }
 0x7ee   :  { %917 = vrot.lane.b32.xlu1 %v915_v55, %s2855_s24 }
 0x7f7   :  { %v863_v59 = vpop.permute.xlu0 %862 }
 0x7f8   :  { %v865_v49 = vmul.f32 %v863_v59, %v860_v58 }
 0x7fa   :  { %v3104_v61 = vadd.f32 %v866_v42, %v865_v49 }
 0x7fc   :  { %v868_v63 = vpack.c.bf16 %v3104_v61, %v3104_v61 }
 0x7fe   :  { %870 = vrot.lane.b32.xlu0 %v868_v63, %s2855_s24 }
 0x860   :  { %v918_v44 = vpop.permute.xlu1 %917 }
 0x861   :  { %2515 = vmatmul.mubr.msk.bf16.vlgmr.msra.gmra.mrb[12].mxu1 %vm55_vm1, %v918_v44 }
 0x862   :  { %2527 = vmatpush3.bf16.msra.mxu1 %v2990_v39  ;;  %2530 = vmatprep.mubr.msk.bf16.mxu1 %vm2852_vm0, %v2851_v0 }
 0x863   :  { %2528 = vmatprep.subr.bf16.mxu1 %v2851_v0 }
 0x866   :  { %2529 = vmatpush3.bf16.msra.mxu1 %v2993_v40 }
 0x867   :  { %2542 = vmatprep.subr.bf16.mxu1 %v2851_v0 }
 0x870   :  { %v871_v21 = vpop.permute.xlu0 %870 }
 0x871   :  { %2507 = vmatmul.mubr.msk.bf16.vlgmr.msra.gmra.mrb[32].mxu0 %vm55_vm1, %v871_v21 }
 0x872   :  { %2519 = vmatpush3.bf16.msra.mxu0 %v2926_v14  ;;  %2522 = vmatprep.mubr.msk.bf16.mxu0 %vm2852_vm0, %v2851_v0 }
 0x873   :  { %2520 = vmatprep.subr.bf16.mxu0 %v2851_v0 }
 0x876   :  { %2521 = vmatpush3.bf16.msra.mxu0 %v2935_v19 }
 0x877   :  { %2534 = vmatprep.subr.bf16.mxu0 %v2851_v0 }
 0x879   :  { %2523 = vmatmul.mubr.msk.bf16.vlgmr.msra.gmra.mrb[36].mxu0 %vm55_vm1, %v871_v21 }
 0x87a   :  { %2535 = vmatpush3.bf16.msra.mxu0 %v3008_v53  ;;  %2538 = vmatprep.mubr.msk.bf16.mxu0 %vm2852_vm0, %v2851_v0 }
 0x87b   :  { %2536 = vmatprep.subr.bf16.mxu0 %v2851_v0 }
 0x87e   :  { %2537 = vmatpush3.bf16.msra.mxu0 %v3012_v57 }
 0x87f   :  { %2550 = vmatprep.subr.bf16.mxu0 %v2851_v0 }
 0x934   :  { %v956_v1 = vpop.f32.mrb[12].mxu1 }
 0x935   :  { %v957_v2 = vadd.f32 %v3036_v62, %v956_v1  ;;  %v2516_v3 = vpop.f32.mrb[13].mxu1 }
 0x936   :  { %v959_v4 = vpop.f32.mrb[14].mxu1 }
 0x937   :  { %970 = vrot.lane.b32.xlu1 %v957_v2, %s2849_s25  ;;  %v2517_v5 = vpop.f32.mrb[15].mxu1 }
 0x944   :  { %v909_v6 = vpop.f32.mrb[32].mxu0 }
 0x945   :  { %v2508_v7 = vpop.f32.mrb[33].mxu0  ;;  %v910_v18 = vadd.f32 %v3045_v10, %v909_v6 }
 0x946   :  { %v912_v8 = vpop.f32.mrb[34].mxu0 }
 0x947   :  { %v2509_v9 = vpop.f32.mrb[35].mxu0  ;;  %v962_v20 = vadd.f32 %v957_v2, %v910_v18 }
 0x949   :  { %v2260_v22 = vmul.f32 -1.442695, %v962_v20 }
 0x94b   :  { %2741 = vpow2.f32 %v2260_v22 }
 0x94c   :  { %v1022_v11 = vpop.f32.mrb[36].mxu0 }
 0x94d   :  { %v1023_v12 = vadd.f32 %v2980_v60, %v1022_v11  ;;  %v2524_v13 = vpop.f32.mrb[37].mxu0 }
 0x94e   :  { %v1025_v15 = vpop.f32.mrb[38].mxu0 }
 0x94f   :  { %1036 = vrot.lane.b32.xlu0 %v1023_v12, %s2849_s25  ;;  %v2525_v17 = vpop.f32.mrb[39].mxu0  ;;  %v1028_v25 = vadd.f32 %v1023_v12, %v2965_v45 }
 0x951   :  { %v2262_v26 = vmul.f32 -1.442695, %v1028_v25 }
 0x955   :  { %v2742_v23 = vpop.eup %2741 }
 0x956   :  { %v966_v24 = vadd.f32 1.0, %v2742_v23 }
 0x958   :  { %2743 = vrcp.f32 %v966_v24 }
 0x959   :  { %2745 = vpow2.f32 %v2262_v26 }
 0x962   :  { %v2744_v27 = vpop.eup %2743 }
 0x963   :  { %v2746_v30 = vpop.eup %2745  ;;  %v980_v48 = vsub.f32 1.0, %v2744_v27  ;;  %v986_v55 = vmul.f32 %v2744_v27, %v3098_v51 }
 0x964   :  { %v1032_v31 = vadd.f32 1.0, %v2746_v30 }
 0x966   :  { %2747 = vrcp.f32 %v1032_v31 }
 0x970   :  { %v2748_v33 = vpop.eup %2747 }
 0x971   :  { %v1046_v49 = vsub.f32 1.0, %v2748_v33 }
 0x9a9   :  { %v971_v28 = vpop.permute.xlu1 %970 }
 0x9aa   :  { %v973_v29 = vmul.f32 %v2744_v27, %v971_v28 }
 0x9ac   :  { %975 = vrot.lane.b32.xlu1 %v973_v29, %s2849_s25 }
 0x9c1   :  { %v1037_v32 = vpop.permute.xlu0 %1036 }
 0x9c2   :  { %v1039_v34 = vmul.f32 %v2748_v33, %v1037_v32 }
 0x9c4   :  { %1041 = vrot.lane.b32.xlu0 %v1039_v34, %s2849_s25 }
 0xa1e   :  { %v976_v36 = vpop.permute.xlu1 %975 }
 0xa1f   :  { %v978_v37 = vadd.f32 %v976_v36, %v910_v18 }
 0xa21   :  { %2749 = vtanh.f32 %v978_v37 }
 0xa2b   :  { %v2750_v38 = vpop.eup %2749 }
 0xa2c   :  { %982 = vrot.lane.b32.xlu1 %v2750_v38, %s2855_s24 }
 0xa36   :  { %v1042_v41 = vpop.permute.xlu0 %1041 }
 0xa37   :  { %v1044_v43 = vadd.f32 %v1042_v41, %v2965_v45  ;;  %v1052_v45 = vmul.f32 %v2748_v33, %v3104_v61 }
 0xa39   :  { %2751 = vtanh.f32 %v1044_v43 }
 0xa43   :  { %v2752_v46 = vpop.eup %2751 }
 0xa44   :  { %1048 = vrot.lane.b32.xlu0 %v2752_v46, %s2855_s24 }
 0xa9e   :  { %v983_v47 = vpop.permute.xlu1 %982 }
 0xa9f   :  { %v985_v58 = vmul.f32 %v983_v47, %v980_v48 }
 0xaa1   :  { %v3142_v59 = vadd.f32 %v986_v55, %v985_v58 }
 0xaa3   :  { %v1101_v42 = vpack.c.bf16 %v3142_v59, %v3142_v59 }
 0xaa5   :  { %1103 = vrot.lane.b32.xlu1 %v1101_v42, %s2855_s24 }
 0xab6   :  { %v1049_v63 = vpop.permute.xlu0 %1048 }
 0xab7   :  { %v1051_v44 = vmul.f32 %v1049_v63, %v1046_v49 }
 0xab9   :  { %v3148_v21 = vadd.f32 %v1052_v45, %v1051_v44 }
 0xabb   :  { %v1054_v1 = vpack.c.bf16 %v3148_v21, %v3148_v21 }
 0xabd   :  { %1056 = vrot.lane.b32.xlu0 %v1054_v1, %s2855_s24 }
 0xb17   :  { %v1104_v51 = vpop.permute.xlu1 %1103 }
 0xb18   :  { %2539 = vmatmul.mubr.msk.bf16.vlgmr.msra.gmra.mrb[40].mxu0 %vm55_vm1, %v1104_v51 }
 0xb19   :  { %2551 = vmatpush3.bf16.msra.mxu0 %v2990_v39  ;;  %2554 = vmatprep.mubr.msk.bf16.mxu0 %vm2852_vm0, %v2851_v0 }
 0xb1a   :  { %2552 = vmatprep.subr.bf16.mxu0 %v2851_v0 }
 0xb1d   :  { %2553 = vmatpush3.bf16.msra.mxu0 %v2993_v40 }
 0xb1e   :  { %2566 = vmatprep.subr.bf16.mxu0 %v2851_v0 }
 0xb2f   :  { %v1057_v61 = vpop.permute.xlu0 %1056 }
 0xb30   :  { %2531 = vmatmul.mubr.msk.bf16.vlgmr.msra.gmra.mrb[16].mxu1 %vm55_vm1, %v1057_v61 }
 0xb31   :  { %2543 = vmatpush3.bf16.msra.mxu1 %v2926_v14  ;;  %2546 = vmatprep.mubr.msk.bf16.mxu1 %vm2852_vm0, %v2851_v0 }
 0xb32   :  { %2544 = vmatprep.subr.bf16.mxu1 %v2851_v0 }
 0xb35   :  { %2545 = vmatpush3.bf16.msra.mxu1 %v2935_v19 }
 0xb36   :  { %2558 = vmatprep.subr.bf16.mxu1 %v2851_v0 }
 0xb38   :  { %2547 = vmatmul.mubr.msk.bf16.vlgmr.msra.gmra.mrb[20].mxu1 %vm55_vm1, %v1057_v61  ;;  %v3205_v61 = vld [vmem:[#allocation2 + $0x60] sm:$0xff]  }
 0xb39   :  { %2559 = vmatpush3.bf16.msra.mxu1 %v3008_v53  ;;  %2562 = vmatprep.mubr.msk.bf16.mxu1 %vm2852_vm0, %v2851_v0 }
 0xb3a   :  { %2560 = vmatprep.subr.bf16.mxu1 %v2851_v0 }
 0xb3d   :  { %2561 = vmatpush3.bf16.msra.mxu1 %v3012_v57 }
 0xb3e   :  { %2574 = vmatprep.subr.bf16.mxu1 %v2851_v0 }
 0xbeb   :  { %v1142_v14 = vpop.f32.mrb[40].mxu0 }
 0xbec   :  { %v1143_v2 = vadd.f32 %v3036_v62, %v1142_v14  ;;  %v2540_v3 = vpop.f32.mrb[41].mxu0 }
 0xbed   :  { %v1145_v4 = vpop.f32.mrb[42].mxu0 }
 0xbee   :  { %1156 = vrot.lane.b32.xlu0 %v1143_v2, %s2849_s25  ;;  %v2541_v5 = vpop.f32.mrb[43].mxu0 }
 0xc03   :  { %v1095_v6 = vpop.f32.mrb[16].mxu1 }
 0xc04   :  { %v2532_v7 = vpop.f32.mrb[17].mxu1  ;;  %v1096_v18 = vadd.f32 %v3045_v10, %v1095_v6 }
 0xc05   :  { %v1098_v8 = vpop.f32.mrb[18].mxu1 }
 0xc06   :  { %v2533_v9 = vpop.f32.mrb[19].mxu1  ;;  %v1148_v20 = vadd.f32 %v1143_v2, %v1096_v18 }
 0xc08   :  { %v2265_v22 = vmul.f32 -1.442695, %v1148_v20 }
 0xc0a   :  { %2753 = vpow2.f32 %v2265_v22 }
 0xc0b   :  { %v1208_v11 = vpop.f32.mrb[20].mxu1 }
 0xc0c   :  { %v1209_v12 = vadd.f32 %v2980_v60, %v1208_v11  ;;  %v2548_v13 = vpop.f32.mrb[21].mxu1 }
 0xc0d   :  { %v1211_v15 = vpop.f32.mrb[22].mxu1 }
 0xc0e   :  { %1222 = vrot.lane.b32.xlu1 %v1209_v12, %s2849_s25  ;;  %v2549_v17 = vpop.f32.mrb[23].mxu1  ;;  %v1214_v25 = vadd.f32 %v1209_v12, %v2971_v52 }
 0xc10   :  { %v2267_v28 = vmul.f32 -1.442695, %v1214_v25 }
 0xc14   :  { %v2754_v23 = vpop.eup %2753 }
 0xc15   :  { %v1152_v24 = vadd.f32 1.0, %v2754_v23 }
 0xc17   :  { %2755 = vrcp.f32 %v1152_v24 }
 0xc18   :  { %2757 = vpow2.f32 %v2267_v28 }
 0xc21   :  { %v2756_v26 = vpop.eup %2755 }
 0xc22   :  { %v2758_v30 = vpop.eup %2757  ;;  %v1166_v48 = vsub.f32 1.0, %v2756_v26  ;;  %v1172_v55 = vmul.f32 %v2756_v26, %v3142_v59 }
 0xc23   :  { %v1218_v31 = vadd.f32 1.0, %v2758_v30 }
 0xc25   :  { %2759 = vrcp.f32 %v1218_v31 }
 0xc2f   :  { %v2760_v33 = vpop.eup %2759 }
 0xc30   :  { %v1232_v63 = vsub.f32 1.0, %v2760_v33 }
 0xc60   :  { %v1157_v27 = vpop.permute.xlu0 %1156 }
 0xc61   :  { %v1159_v29 = vmul.f32 %v2756_v26, %v1157_v27 }
 0xc63   :  { %1161 = vrot.lane.b32.xlu0 %v1159_v29, %s2849_s25 }
 0xc80   :  { %v1223_v32 = vpop.permute.xlu1 %1222 }
 0xc81   :  { %v1225_v34 = vmul.f32 %v2760_v33, %v1223_v32 }
 0xc83   :  { %1227 = vrot.lane.b32.xlu1 %v1225_v34, %s2849_s25 }
 0xcd5   :  { %v1162_v36 = vpop.permute.xlu0 %1161 }
 0xcd6   :  { %v1164_v37 = vadd.f32 %v1162_v36, %v1096_v18 }
 0xcd8   :  { %2761 = vtanh.f32 %v1164_v37 }
 0xce2   :  { %v2762_v38 = vpop.eup %2761 }
 0xce3   :  { %1168 = vrot.lane.b32.xlu0 %v2762_v38, %s2855_s24 }
 0xcf5   :  { %v1228_v41 = vpop.permute.xlu1 %1227 }
 0xcf6   :  { %v1230_v43 = vadd.f32 %v1228_v41, %v2971_v52  ;;  %v1238_v52 = vmul.f32 %v2760_v33, %v3148_v21 }
 0xcf8   :  { %2763 = vtanh.f32 %v1230_v43 }
 0xd02   :  { %v2764_v46 = vpop.eup %2763 }
 0xd03   :  { %1234 = vrot.lane.b32.xlu1 %v2764_v46, %s2855_s24 }
 0xd55   :  { %v1169_v47 = vpop.permute.xlu0 %1168 }
 0xd56   :  { %v1171_v58 = vmul.f32 %v1169_v47, %v1166_v48 }
 0xd58   :  { %v3186_v42 = vadd.f32 %v1172_v55, %v1171_v58 }
 0xd5a   :  { %v1287_v49 = vpack.c.bf16 %v3186_v42, %v3186_v42 }
 0xd5c   :  { %1289 = vrot.lane.b32.xlu0 %v1287_v49, %s2855_s24 }
 0xd75   :  { %v1235_v45 = vpop.permute.xlu1 %1234 }
 0xd76   :  { %v1237_v44 = vmul.f32 %v1235_v45, %v1232_v63 }
 0xd78   :  { %v3192_v1 = vadd.f32 %v1238_v52, %v1237_v44 }
 0xd7a   :  { %v1240_v51 = vpack.c.bf16 %v3192_v1, %v3192_v1 }
 0xd7c   :  { %1242 = vrot.lane.b32.xlu1 %v1240_v51, %s2855_s24 }
 0xdce   :  { %v1290_v59 = vpop.permute.xlu0 %1289 }
 0xdcf   :  { %2563 = vmatmul.mubr.msk.bf16.vlgmr.msra.gmra.mrb[24].mxu1 %vm55_vm1, %v1290_v59 }
 0xdd0   :  { %2575 = vmatpush3.bf16.msra.mxu1 %v2990_v39  ;;  %2578 = vmatprep.mubr.msk.bf16.mxu1 %vm2852_vm0, %v2851_v0 }
 0xdd1   :  { %2576 = vmatprep.subr.bf16.mxu1 %v2851_v0 }
 0xdd4   :  { %2577 = vmatpush3.bf16.msra.mxu1 %v2993_v40 }
 0xdd5   :  { %2590 = vmatprep.subr.bf16.mxu1 %v2851_v0 }
 0xdee   :  { %v1243_v21 = vpop.permute.xlu1 %1242 }
 0xdef   :  { %2555 = vmatmul.mubr.msk.bf16.vlgmr.msra.gmra.mrb[44].mxu0 %vm55_vm1, %v1243_v21 }
 0xdf0   :  { %2567 = vmatpush3.bf16.msra.mxu0 %v3205_v61  ;;  %2570 = vmatprep.mubr.msk.bf16.mxu0 %vm2852_vm0, %v2851_v0 }
 0xdf1   :  { %2568 = vmatprep.subr.bf16.mxu0 %v2851_v0 }
 0xdf4   :  { %2569 = vmatpush3.bf16.msra.mxu0 %v2935_v19 }
 0xdf5   :  { %2582 = vmatprep.subr.bf16.mxu0 %v2851_v0 }
 0xdf7   :  { %2571 = vmatmul.mubr.msk.bf16.vlgmr.msra.gmra.mrb[48].mxu0 %vm55_vm1, %v1243_v21 }
 0xdf8   :  { %2583 = vmatpush3.bf16.msra.mxu0 %v3008_v53  ;;  %2586 = vmatprep.mubr.msk.bf16.mxu0 %vm2852_vm0, %v2851_v0 }
 0xdf9   :  { %2584 = vmatprep.subr.bf16.mxu0 %v2851_v0 }
 0xdfc   :  { %2585 = vmatpush3.bf16.msra.mxu0 %v3012_v57 }
 0xdfd   :  { %2598 = vmatprep.subr.bf16.mxu0 %v2851_v0 }
 0xea2   :  { %v1328_v14 = vpop.f32.mrb[24].mxu1 }
 0xea3   :  { %v1329_v2 = vadd.f32 %v3036_v62, %v1328_v14  ;;  %v2564_v3 = vpop.f32.mrb[25].mxu1 }
 0xea4   :  { %v1331_v19 = vpop.f32.mrb[26].mxu1 }
 0xea5   :  { %1342 = vrot.lane.b32.xlu0 %v1329_v2, %s2849_s25  ;;  %v2565_v4 = vpop.f32.mrb[27].mxu1 }
 0xec2   :  { %v1281_v5 = vpop.f32.mrb[44].mxu0 }
 0xec3   :  { %v2556_v6 = vpop.f32.mrb[45].mxu0  ;;  %v1282_v17 = vadd.f32 %v3045_v10, %v1281_v5 }
 0xec4   :  { %v1284_v7 = vpop.f32.mrb[46].mxu0 }
 0xec5   :  { %v2557_v8 = vpop.f32.mrb[47].mxu0  ;;  %v1334_v18 = vadd.f32 %v1329_v2, %v1282_v17 }
 0xec7   :  { %v2270_v20 = vmul.f32 -1.442695, %v1334_v18 }
 0xec9   :  { %2765 = vpow2.f32 %v2270_v20 }
 0xeca   :  { %v1394_v9 = vpop.f32.mrb[48].mxu0 }
 0xecb   :  { %v1395_v11 = vadd.f32 %v2980_v60, %v1394_v9  ;;  %v2572_v12 = vpop.f32.mrb[49].mxu0 }
 0xecc   :  { %v1397_v13 = vpop.f32.mrb[50].mxu0 }
 0xecd   :  { %1408 = vrot.lane.b32.xlu1 %v1395_v11, %s2849_s25  ;;  %v2573_v15 = vpop.f32.mrb[51].mxu0  ;;  %v1400_v27 = vadd.f32 %v1395_v11, %v2975_v56 }
 0xecf   :  { %v2272_v28 = vmul.f32 -1.442695, %v1400_v27 }
 0xed3   :  { %v2766_v22 = vpop.eup %2765 }
 0xed4   :  { %v1338_v23 = vadd.f32 1.0, %v2766_v22 }
 0xed6   :  { %2767 = vrcp.f32 %v1338_v23 }
 0xed7   :  { %2769 = vpow2.f32 %v2272_v28 }
 0xee0   :  { %v2768_v24 = vpop.eup %2767 }
 0xee1   :  { %v2770_v29 = vpop.eup %2769  ;;  %v1352_v46 = vsub.f32 1.0, %v2768_v24  ;;  %v1358_v47 = vmul.f32 %v2768_v24, %v3186_v42 }
 0xee2   :  { %v1404_v30 = vadd.f32 1.0, %v2770_v29 }
 0xee4   :  { %2771 = vrcp.f32 %v1404_v30 }
 0xeee   :  { %v2772_v31 = vpop.eup %2771 }
 0xeef   :  { %v1418_v63 = vsub.f32 1.0, %v2772_v31 }
 0xf17   :  { %v1343_v25 = vpop.permute.xlu0 %1342 }
 0xf18   :  { %v1345_v26 = vmul.f32 %v2768_v24, %v1343_v25 }
 0xf1a   :  { %1347 = vrot.lane.b32.xlu0 %v1345_v26, %s2849_s25 }
 0xf3f   :  { %v1409_v33 = vpop.permute.xlu1 %1408 }
 0xf40   :  { %v1411_v32 = vmul.f32 %v2772_v31, %v1409_v33 }
 0xf42   :  { %1413 = vrot.lane.b32.xlu1 %v1411_v32, %s2849_s25 }
 0xf8c   :  { %v1348_v34 = vpop.permute.xlu0 %1347 }
 0xf8d   :  { %v1350_v36 = vadd.f32 %v1348_v34, %v1282_v17 }
 0xf8f   :  { %2773 = vtanh.f32 %v1350_v36 }
 0xf99   :  { %v2774_v37 = vpop.eup %2773 }
 0xf9a   :  { %1354 = vrot.lane.b32.xlu0 %v2774_v37, %s2855_s24 }
 0xfb4   :  { %v1414_v38 = vpop.permute.xlu1 %1413 }
 0xfb5   :  { %v1416_v41 = vadd.f32 %v1414_v38, %v2975_v56  ;;  %v1424_v56 = vmul.f32 %v2772_v31, %v3192_v1 }
 0xfb7   :  { %2775 = vtanh.f32 %v1416_v41 }
 0xfc1   :  { %v2776_v43 = vpop.eup %2775 }
 0xfc2   :  { %1420 = vrot.lane.b32.xlu1 %v2776_v43, %s2855_s24 }
0x100c   :  { %v1355_v48 = vpop.permute.xlu0 %1354 }
0x100d   :  { %v1357_v55 = vmul.f32 %v1355_v48, %v1352_v46 }
0x100f   :  { %v3232_v58 = vadd.f32 %v1358_v47, %v1357_v55 }
0x1011   :  { %v1473_v49 = vpack.c.bf16 %v3232_v58, %v3232_v58 }
0x1013   :  { %1475 = vrot.lane.b32.xlu0 %v1473_v49, %s2855_s24 }
0x1034   :  { %v1421_v45 = vpop.permute.xlu1 %1420 }
0x1035   :  { %v1423_v52 = vmul.f32 %v1421_v45, %v1418_v63 }
0x1037   :  { %v3238_v44 = vadd.f32 %v1424_v56, %v1423_v52  ;;  %v2819_v56 = vld [vmem:[#allocation2 + $0x70] sm:$0xff]   ;;  %v2820_v52 = vld [vmem:[#allocation2 + $0x78] sm:$0xff]  }
0x1039   :  { %v1426_v51 = vpack.c.bf16 %v3238_v44, %v3238_v44 }
0x103b   :  { %1428 = vrot.lane.b32.xlu1 %v1426_v51, %s2855_s24 }
0x1085   :  { %v1476_v42 = vpop.permute.xlu0 %1475 }
0x1086   :  { %2587 = vmatmul.mubr.msk.bf16.vlgmr.msra.gmra.mrb[52].mxu0 %vm55_vm1, %v1476_v42 }
0x1087   :  { %2599 = vmatpush3.bf16.msra.mxu0 %v2990_v39  ;;  %2602 = vmatprep.mubr.msk.bf16.mxu0 %vm2852_vm0, %v2851_v0  ;;  %v3255_v39 = vld [vmem:[#allocation2 + $0x68] sm:$0xff]  }
0x1088   :  { %2600 = vmatprep.subr.bf16.mxu0 %v2851_v0 }
0x108b   :  { %2601 = vmatpush3.bf16.msra.mxu0 %v2993_v40 }
0x108c   :  { %2614 = vmatprep.subr.bf16.mxu0 %v2851_v0 }
0x10ad   :  { %v1429_v1 = vpop.permute.xlu1 %1428 }
0x10ae   :  { %2579 = vmatmul.mubr.msk.bf16.vlgmr.msra.gmra.mrb[28].mxu1 %vm55_vm1, %v1429_v1 }
0x10af   :  { %2591 = vmatpush3.bf16.msra.mxu1 %v3205_v61  ;;  %2594 = vmatprep.mubr.msk.bf16.mxu1 %vm2852_vm0, %v2851_v0 }
0x10b0   :  { %2592 = vmatprep.subr.bf16.mxu1 %v2851_v0 }
0x10b3   :  { %2593 = vmatpush3.bf16.msra.mxu1 %v3255_v39 }
0x10b4   :  { %2606 = vmatprep.subr.bf16.mxu1 %v2851_v0 }
0x10b6   :  { %2595 = vmatmul.mubr.msk.bf16.vlgmr.msra.gmra.mrb[32].mxu1 %vm55_vm1, %v1429_v1 }
0x10b7   :  { %2607 = vmatpush3.bf16.msra.mxu1 %v3008_v53  ;;  %2610 = vmatprep.mubr.msk.bf16.mxu1 %vm2852_vm0, %v2851_v0 }
0x10b8   :  { %2608 = vmatprep.subr.bf16.mxu1 %v2851_v0 }
0x10bb   :  { %2609 = vmatpush3.bf16.msra.mxu1 %v3012_v57 }
0x10bc   :  { %2622 = vmatprep.subr.bf16.mxu1 %v2851_v0 }
0x1159   :  { %v1514_v40 = vpop.f32.mrb[52].mxu0 }
0x115a   :  { %v1515_v59 = vadd.f32 %v3036_v62, %v1514_v40  ;;  %v2588_v21 = vpop.f32.mrb[53].mxu0 }
0x115b   :  { %v1517_v14 = vpop.f32.mrb[54].mxu0 }
0x115c   :  { %1528 = vrot.lane.b32.xlu0 %v1515_v59, %s2849_s25  ;;  %v2589_v2 = vpop.f32.mrb[55].mxu0 }
0x115d   :  { %v2821_v2 = vld [vmem:[%s3389_s3 + $0x3] ss:$0 sm:$0xff] }
0x1181   :  { %v1467_v3 = vpop.f32.mrb[28].mxu1 }
0x1182   :  { %v2580_v19 = vpop.f32.mrb[29].mxu1  ;;  %v1468_v12 = vadd.f32 %v3045_v10, %v1467_v3 }
0x1183   :  { %v1470_v4 = vpop.f32.mrb[30].mxu1 }
0x1184   :  { %v2581_v5 = vpop.f32.mrb[31].mxu1  ;;  %v1520_v13 = vadd.f32 %v1515_v59, %v1468_v12 }
0x1186   :  { %v2275_v15 = vmul.f32 -1.442695, %v1520_v13 }
0x1188   :  { %2777 = vpow2.f32 %v2275_v15 }
0x1189   :  { %v1580_v6 = vpop.f32.mrb[32].mxu1 }
0x118a   :  { %v1581_v7 = vadd.f32 %v2980_v60, %v1580_v6  ;;  %v2596_v8 = vpop.f32.mrb[33].mxu1 }
0x118b   :  { %v1583_v9 = vpop.f32.mrb[34].mxu1 }
0x118c   :  { %1594 = vrot.lane.b32.xlu1 %v1581_v7, %s2849_s25  ;;  %v2597_v11 = vpop.f32.mrb[35].mxu1  ;;  %v1586_v60 = vadd.f32 %v1581_v7, %v2969_v50 }
0x118e   :  { %v2277_v24 = vmul.f32 -1.442695, %v1586_v60 }
0x1192   :  { %v2778_v17 = vpop.eup %2777 }
0x1193   :  { %v1524_v18 = vadd.f32 1.0, %v2778_v17 }
0x1195   :  { %2779 = vrcp.f32 %v1524_v18 }
0x1196   :  { %2781 = vpow2.f32 %v2277_v24 }
0x119f   :  { %v2780_v20 = vpop.eup %2779 }
0x11a0   :  { %v2782_v25 = vpop.eup %2781  ;;  %v1538_v37 = vsub.f32 1.0, %v2780_v20  ;;  %v1544_v41 = vmul.f32 %v2780_v20, %v3232_v58 }
0x11a1   :  { %v1590_v26 = vadd.f32 1.0, %v2782_v25 }
0x11a3   :  { %2783 = vrcp.f32 %v1590_v26 }
0x11ad   :  { %v2784_v27 = vpop.eup %2783 }
0x11ae   :  { %v1604_v47 = vsub.f32 1.0, %v2784_v27 }
0x11ce   :  { %v1529_v22 = vpop.permute.xlu0 %1528 }
0x11cf   :  { %v1531_v23 = vmul.f32 %v2780_v20, %v1529_v22 }
0x11d1   :  { %1533 = vrot.lane.b32.xlu0 %v1531_v23, %s2849_s25 }
0x11fe   :  { %v1595_v28 = vpop.permute.xlu1 %1594 }
0x11ff   :  { %v1597_v29 = vmul.f32 %v2784_v27, %v1595_v28 }
0x1201   :  { %1599 = vrot.lane.b32.xlu1 %v1597_v29, %s2849_s25 }
0x1243   :  { %v1534_v30 = vpop.permute.xlu0 %1533 }
0x1244   :  { %v1536_v31 = vadd.f32 %v1534_v30, %v1468_v12 }
0x1246   :  { %2785 = vtanh.f32 %v1536_v31 }
0x1250   :  { %v2786_v33 = vpop.eup %2785 }
0x1251   :  { %1540 = vrot.lane.b32.xlu0 %v2786_v33, %s2855_s24 }
0x1273   :  { %v1600_v32 = vpop.permute.xlu1 %1599 }
0x1274   :  { %v1602_v34 = vadd.f32 %v1600_v32, %v2969_v50  ;;  %v1610_v50 = vmul.f32 %v2784_v27, %v3238_v44 }
0x1276   :  { %2787 = vtanh.f32 %v1602_v34 }
0x1280   :  { %v2788_v36 = vpop.eup %2787 }
0x1281   :  { %1606 = vrot.lane.b32.xlu1 %v2788_v36, %s2855_s24 }
0x12c3   :  { %v1541_v38 = vpop.permute.xlu0 %1540 }
0x12c4   :  { %v1543_v43 = vmul.f32 %v1541_v38, %v1538_v37 }
0x12c6   :  { %v3278_v46 = vadd.f32 %v1544_v41, %v1543_v43 }
0x12c8   :  { %v1659_v48 = vpack.c.bf16 %v3278_v46, %v3278_v46 }
0x12ca   :  { %1661 = vrot.lane.b32.xlu0 %v1659_v48, %s2855_s24 }
0x12f3   :  { %v1607_v55 = vpop.permute.xlu1 %1606 }
0x12f4   :  { %v1609_v49 = vmul.f32 %v1607_v55, %v1604_v47 }
0x12f6   :  { %v3284_v63 = vadd.f32 %v1610_v50, %v1609_v49 }
0x12f8   :  { %v1612_v45 = vpack.c.bf16 %v3284_v63, %v3284_v63 }
0x12fa   :  { %1614 = vrot.lane.b32.xlu1 %v1612_v45, %s2855_s24 }
0x133c   :  { %v1662_v58 = vpop.permute.xlu0 %1661 }
0x133d   :  { %2611 = vmatmul.mubr.msk.bf16.vlgmr.msra.gmra.mrb[36].mxu1 %vm55_vm1, %v1662_v58 }
0x133e   :  { %2623 = vmatpush3.bf16.msra.mxu1 %v2819_v56  ;;  %2626 = vmatprep.mubr.msk.bf16.mxu1 %vm2852_vm0, %v2851_v0 }
0x133f   :  { %2624 = vmatprep.subr.bf16.mxu1 %v2851_v0 }
0x1342   :  { %2625 = vmatpush3.bf16.msra.mxu1 %v2820_v52 }
0x1343   :  { %2638 = vmatprep.subr.bf16.mxu1 %v2851_v0 }
0x136c   :  { %v1615_v44 = vpop.permute.xlu1 %1614 }
0x136d   :  { %2603 = vmatmul.mubr.msk.bf16.vlgmr.msra.gmra.mrb[56].mxu0 %vm55_vm1, %v1615_v44 }
0x136e   :  { %2615 = vmatpush3.bf16.msra.mxu0 %v3205_v61  ;;  %2618 = vmatprep.mubr.msk.bf16.mxu0 %vm2852_vm0, %v2851_v0 }
0x136f   :  { %2616 = vmatprep.subr.bf16.mxu0 %v2851_v0 }
0x1372   :  { %2617 = vmatpush3.bf16.msra.mxu0 %v3255_v39 }
0x1373   :  { %2630 = vmatprep.subr.bf16.mxu0 %v2851_v0 }
0x1375   :  { %2619 = vmatmul.mubr.msk.bf16.vlgmr.msra.gmra.mrb[60].mxu0 %vm55_vm1, %v1615_v44 }
0x1376   :  { %2631 = vmatpush3.bf16.msra.mxu0 %v3008_v53  ;;  %2634 = vmatprep.mubr.msk.bf16.mxu0 %vm2852_vm0, %v2851_v0 }
0x1377   :  { %2632 = vmatprep.subr.bf16.mxu0 %v2851_v0 }
0x137a   :  { %2633 = vmatpush3.bf16.msra.mxu0 %v3012_v57 }
0x137b   :  { %2646 = vmatprep.subr.bf16.mxu0 %v2851_v0 }
0x1410   :  { %v1700_v61 = vpop.f32.mrb[36].mxu1 }
0x1411   :  { %v1701_v51 = vadd.f32 %v3036_v62, %v1700_v61  ;;  %v2612_v42 = vpop.f32.mrb[37].mxu1 }
0x1412   :  { %v1703_v1 = vpop.f32.mrb[38].mxu1 }
0x1413   :  { %1714 = vrot.lane.b32.xlu0 %v1701_v51, %s2849_s25  ;;  %v2613_v39 = vpop.f32.mrb[39].mxu1 }
0x1440   :  { %v1653_v40 = vpop.f32.mrb[56].mxu0 }
0x1441   :  { %v2604_v59 = vpop.f32.mrb[57].mxu0  ;;  %v1654_v4 = vadd.f32 %v3045_v10, %v1653_v40 }
0x1442   :  { %v1656_v53 = vpop.f32.mrb[58].mxu0 }
0x1443   :  { %v2605_v21 = vpop.f32.mrb[59].mxu0  ;;  %v1706_v5 = vadd.f32 %v1701_v51, %v1654_v4 }
0x1445   :  { %v2280_v6 = vmul.f32 -1.442695, %v1706_v5 }
0x1447   :  { %2789 = vpow2.f32 %v2280_v6 }
0x1448   :  { %v1766_v14 = vpop.f32.mrb[60].mxu0 }
0x1449   :  { %v1767_v57 = vadd.f32 %v2821_v2, %v1766_v14  ;;  %v2620_v3 = vpop.f32.mrb[61].mxu0  ;;  %v2697_v2 = vld [vmem:[#allocation2 + $0x90] sm:$0xff]  }
0x144a   :  { %v1769_v19 = vpop.f32.mrb[62].mxu0 }
0x144b   :  { %1780 = vrot.lane.b32.xlu1 %v1767_v57, %s2849_s25  ;;  %v2621_v62 = vpop.f32.mrb[63].mxu0  ;;  %v1772_v13 = vadd.f32 %v1767_v57, %v2973_v54 }
0x144c   :  { %v2698_v62 = vld [vmem:[#allocation2 + $0x98] sm:$0xff]  }
0x144d   :  { %v2282_v15 = vmul.f32 -1.442695, %v1772_v13 }
0x1451   :  { %v2790_v7 = vpop.eup %2789 }
0x1452   :  { %v1710_v8 = vadd.f32 1.0, %v2790_v7 }
0x1454   :  { %2791 = vrcp.f32 %v1710_v8  ;;  %v2822_v8 = vld [vmem:[%s3389_s3 + $0x5] ss:$0 sm:$0xff] }
0x1455   :  { %2793 = vpow2.f32 %v2282_v15 }
0x145e   :  { %v2792_v9 = vpop.eup %2791 }
0x145f   :  { %v2794_v17 = vpop.eup %2793  ;;  %v1724_v28 = vsub.f32 1.0, %v2792_v9  ;;  %v1730_v30 = vmul.f32 %v2792_v9, %v3278_v46 }
0x1460   :  { %v1776_v18 = vadd.f32 1.0, %v2794_v17 }
0x1462   :  { %2795 = vrcp.f32 %v1776_v18 }
0x146c   :  { %v2796_v20 = vpop.eup %2795 }
0x146d   :  { %v1790_v43 = vsub.f32 1.0, %v2796_v20  ;;  %v1796_v48 = vmul.f32 %v2796_v20, %v3284_v63 }
0x1485   :  { %v1715_v11 = vpop.permute.xlu0 %1714 }
0x1486   :  { %v1717_v12 = vmul.f32 %v2792_v9, %v1715_v11 }
0x1488   :  { %1719 = vrot.lane.b32.xlu0 %v1717_v12, %s2849_s25 }
0x14bd   :  { %v1781_v10 = vpop.permute.xlu1 %1780 }
0x14be   :  { %v1783_v22 = vmul.f32 %v2796_v20, %v1781_v10 }
0x14c0   :  { %1785 = vrot.lane.b32.xlu1 %v1783_v22, %s2849_s25 }
0x14fa   :  { %v1720_v23 = vpop.permute.xlu0 %1719 }
0x14fb   :  { %v1722_v60 = vadd.f32 %v1720_v23, %v1654_v4 }
0x14fd   :  { %2797 = vtanh.f32 %v1722_v60 }
0x1507   :  { %v2798_v24 = vpop.eup %2797 }
0x1508   :  { %1726 = vrot.lane.b32.xlu0 %v2798_v24, %s2855_s24  ;;  %v2823_v24 = vld [vmem:[%s3389_s3 + $0x4] ss:$0 sm:$0xff] }
0x1532   :  { %v1786_v25 = vpop.permute.xlu1 %1785 }
0x1533   :  { %v1788_v26 = vadd.f32 %v1786_v25, %v2973_v54  ;;  %v2223_v54 = vld [vmem:[%s3389_s3 + $0x1] ss:$0 sm:$0xff] }
0x1534   :  { %v230_v34 = vadd.f32 %v2223_v54, %v2988_v35 }
0x1535   :  { %2799 = vtanh.f32 %v1788_v26 }
0x1536   :  { %v236_v36 = vmul.f32 0.70710677, %v230_v34  ;;  %v235_v19 = vmul.f32 0.5, %v230_v34 }
0x1538   :  { %v239_v37 = vand.u32 2147483647, %v236_v36  ;;  %vm237_vm3 = vcmp.ge.f32.partialorder %v236_v36, 0.0 }
0x1539   :  { %v238_v21 = vsel %vm237_vm3, 1.0, %v2854_v16 }
0x153a   :  { %v240_v38 = vmul.f32 0.3275911, %v239_v37  ;;  %v252_v35 = vsub.f32 0.0, %v239_v37 }
0x153c   :  { %v241_v41 = vadd.f32 1.0, %v240_v38  ;;  %v253_v61 = vmul.f32 %v252_v35, %v239_v37  ;;  %v2699_v35 = vld [vmem:[#allocation2 + $0xa0] sm:$0xff]  }
0x153e   :  { %2801 = vrcp.f32 %v241_v41  ;;  %v254_v42 = vmul.f32 1.442695, %v253_v61 }
0x153f   :  { %v2800_v27 = vpop.eup %2799 }
0x1540   :  { %1792 = vrot.lane.b32.xlu1 %v2800_v27, %s2855_s24  ;;  %2803 = vpow2.f32 %v254_v42 }
0x1548   :  { %v2802_v49 = vpop.eup %2801 }
0x1549   :  { %v243_v45 = vmul.f32 1.0614054, %v2802_v49 }
0x154a   :  { %v2804_v40 = vpop.eup %2803 }
0x154b   :  { %v244_v58 = vadd.f32 -1.4531521, %v243_v45 }
0x154d   :  { %v245_v56 = vmul.f32 %v2802_v49, %v244_v58 }
0x154f   :  { %v246_v52 = vadd.f32 1.4214138, %v245_v56 }
0x1551   :  { %v247_v44 = vmul.f32 %v2802_v49, %v246_v52  ;;  %v2287_v52 = vld [vmem:[%s3389_s3 + $0x7] ss:$0 sm:$0xff] }
0x1553   :  { %v248_v51 = vadd.f32 -0.28449672, %v247_v44  ;;  %v2700_v44 = vld [vmem:[#allocation2 + $0xa8] sm:$0xff]  }
0x1555   :  { %v249_v1 = vmul.f32 %v2802_v49, %v248_v51 }
0x1557   :  { %v250_v39 = vadd.f32 0.2548296, %v249_v1 }
0x1559   :  { %v251_v63 = vmul.f32 %v2802_v49, %v250_v39 }
0x155b   :  { %v256_v59 = vmul.f32 %v2804_v40, %v251_v63 }
0x155d   :  { %v257_v53 = vsub.f32 1.0, %v256_v59 }
0x155f   :  { %v258_v14 = vmul.f32 %v257_v53, %v238_v21 }
0x1561   :  { %v259_v57 = vadd.f32 1.0, %v258_v14 }
0x1563   :  { %v260_v4 = vmul.f32 %v259_v57, %v235_v19  ;;  %v2702_v57 = vld [vmem:[#allocation2 + $0xb8] sm:$0xff]   ;;  %v2704_v19 = vld [vmem:[#allocation2 + $0xc8] sm:$0xff]  }
0x1565   :  { %v1964_v5 = vpack.c.bf16 %v260_v4, %v260_v4  ;;  %v2706_v4 = vld [vmem:[#allocation2 + $0xd8] sm:$0xff]  }
0x157a   :  { %v1727_v29 = vpop.permute.xlu0 %1726 }
0x157b   :  { %v1729_v31 = vmul.f32 %v1727_v29, %v1724_v28 }
0x157d   :  { %v3322_v33 = vadd.f32 %v1730_v30, %v1729_v31 }
0x157f   :  { %v1845_v32 = vpack.c.bf16 %v3322_v33, %v3322_v33 }
0x1581   :  { %1847 = vrot.lane.b32.xlu0 %v1845_v32, %s2855_s24 }
0x15b2   :  { %v1793_v46 = vpop.permute.xlu1 %1792 }
0x15b3   :  { %v1795_v47 = vmul.f32 %v1793_v46, %v1790_v43 }
0x15b5   :  { %v1797_v55 = vadd.f32 %v1796_v48, %v1795_v47 }
0x15b7   :  { %v1798_v50 = vpack.c.bf16 %v1797_v55, %v1797_v55  ;;  %v2286_v55 = vld [vmem:[%s3389_s3 + $0x6] ss:$0 sm:$0xff] }
0x15b9   :  { %1800 = vrot.lane.b32.xlu1 %v1798_v50, %s2855_s24 }
0x15f3   :  { %v1848_v3 = vpop.permute.xlu0 %1847 }
0x15f4   :  { %2635 = vmatmul.mubr.msk.bf16.vlgmr.msra.gmra.mrb[64].mxu0 %vm55_vm1, %v1848_v3  ;;  %v2703_v3 = vld [vmem:[#allocation2 + $0xc0] sm:$0xff]  }
0x15f5   :  { %2647 = vmatpush3.bf16.msra.mxu0 %v2697_v2  ;;  %2650 = vmatprep.mubr.msk.bf16.mxu0 %vm2852_vm0, %v2851_v0  ;;  %v2701_v2 = vld [vmem:[#allocation2 + $0xb0] sm:$0xff]  }
0x15f6   :  { %2648 = vmatprep.subr.bf16.mxu0 %v2851_v0 }
0x15f9   :  { %2649 = vmatpush3.bf16.msra.mxu0 %v2698_v62  ;;  %v2705_v62 = vld [vmem:[#allocation2 + $0xd0] sm:$0xff]  }
0x15fc   :  { %2651 = vmatmul.mubr.msk.bf16.vlgmr.msra.gmra.mrb[68].mxu0 %vm55_vm1, %v1964_v5 }
0x162b   :  { %v1801_v6 = vpop.permute.xlu1 %1800 }
0x162c   :  { %2627 = vmatmul.mubr.msk.bf16.vlgmr.msra.gmra.mrb[40].mxu1 %vm55_vm1, %v1801_v6  ;;  %v2294_v6 = vld [vmem:[%s3389_s3 + $0x8] ss:$0 sm:$0xff] }
0x162d   :  { %2642 = vmatprep.mubr.msk.bf16.mxu1 %vm2852_vm0, %v2851_v0  ;;  %2639 = vmatpush3.bf16.msra.mxu1 %v2699_v35 }
0x162e   :  { %2640 = vmatprep.subr.bf16.mxu1 %v2851_v0 }
0x1631   :  { %2641 = vmatpush3.bf16.msra.mxu1 %v2700_v44 }
0x1632   :  { %2654 = vmatprep.subr.bf16.mxu1 %v2851_v0 }
0x16c7   :  { %v1886_v7 = vpop.f32.mrb[64].mxu0 }
0x16c8   :  { %v1887_v9 = vadd.f32 %v2822_v8, %v1886_v7  ;;  %v2636_v11 = vpop.f32.mrb[65].mxu0 }
0x16c9   :  { %v1889_v12 = vpop.f32.mrb[66].mxu0 }
0x16ca   :  { %1900 = vrot.lane.b32.xlu0 %v1887_v9, %s2849_s25  ;;  %v2637_v13 = vpop.f32.mrb[67].mxu0 }
0x16cf   :  { %v3346_v15 = vpop.f32.mrb[68].mxu0 }
0x16d0   :  { %v2652_v17 = vpop.f32.mrb[69].mxu0 }
0x16d1   :  { %v2080_v18 = vpop.f32.mrb[70].mxu0 }
0x16d2   :  { %v2653_v20 = vpop.f32.mrb[71].mxu0 }
0x16ff   :  { %v1839_v10 = vpop.f32.mrb[40].mxu1 }
0x1700   :  { %v2628_v22 = vpop.f32.mrb[41].mxu1  ;;  %v1840_v25 = vadd.f32 %v2823_v24, %v1839_v10 }
0x1701   :  { %v1842_v23 = vpop.f32.mrb[42].mxu1 }
0x1702   :  { %v2629_v60 = vpop.f32.mrb[43].mxu1  ;;  %v1892_v26 = vadd.f32 %v1887_v9, %v1840_v25 }
0x1704   :  { %v2285_v27 = vmul.f32 -1.442695, %v1892_v26 }
0x1706   :  { %2805 = vpow2.f32 %v2285_v27 }
0x1710   :  { %v2806_v28 = vpop.eup %2805 }
0x1711   :  { %v1896_v29 = vadd.f32 1.0, %v2806_v28 }
0x1713   :  { %2807 = vrcp.f32 %v1896_v29 }
0x171d   :  { %v2808_v30 = vpop.eup %2807 }
0x171e   :  { %v1910_v37 = vsub.f32 1.0, %v2808_v30  ;;  %v1916_v41 = vmul.f32 %v2808_v30, %v3322_v33 }
0x173c   :  { %v1901_v31 = vpop.permute.xlu0 %1900 }
0x173d   :  { %v1903_v32 = vmul.f32 %v2808_v30, %v1901_v31 }
0x173f   :  { %1905 = vrot.lane.b32.xlu1 %v1903_v32, %s2849_s25 }
0x17b1   :  { %v1906_v54 = vpop.permute.xlu1 %1905 }
0x17b2   :  { %v1908_v34 = vadd.f32 %v1906_v54, %v1840_v25 }
0x17b4   :  { %2809 = vtanh.f32 %v1908_v34 }
0x17be   :  { %v2810_v36 = vpop.eup %2809 }
0x17bf   :  { %1912 = vrot.lane.b32.xlu0 %v2810_v36, %s2855_s24 }
0x1831   :  { %v1913_v38 = vpop.permute.xlu0 %1912 }
0x1832   :  { %v1915_v43 = vmul.f32 %v1913_v38, %v1910_v37 }
0x1834   :  { %v1917_v46 = vadd.f32 %v1916_v41, %v1915_v43 }
0x1836   :  { %1919 = vrot.lane.b32.xlu1 %v1917_v46, %s2855_s24 }
0x18a8   :  { %v1920_v48 = vpop.permute.xlu1 %1919 }
0x18a9   :  { %v1922_v47 = vsel %vm55_vm1, %v1920_v48, 0.0 }
0x18aa   :  { %1923 = vadd.xlane.f32.xlu0 %v1922_v47 }
0x18c0   :  { %1946 = vrot.lane.b32.xlu0 %v2286_v55, %s2856_s11 }
0x1937   :  { %v1924_v50 = vpop.xlane.xlu0 %1923 }
0x1938   :  { %v1926_v49 = vmul.f32 0.03125, %v1924_v50 }
0x193a   :  { %v1927_v45 = vsub.f32 %v1917_v46, %v1926_v49  ;;  %v2295_v46 = vld [vmem:[%s3389_s3 + $0x9] ss:$0 sm:$0xff] }
0x193b   :  { %v1947_v39 = vpop.permute.xlu0 %1946 }
0x193c   :  { %v1928_v58 = vmul.f32 %v1927_v45, %v1927_v45 }
0x193e   :  { %1930 = vrot.lane.b32.xlu1 %v1928_v58, %s2855_s24 }
0x19b0   :  { %v1931_v33 = vpop.permute.xlu1 %1930 }
0x19b1   :  { %v1933_v56 = vsel %vm55_vm1, %v1931_v33, 0.0 }
0x19b2   :  { %1934 = vadd.xlane.f32.xlu1 %v1933_v56 }
0x19c3   :  { %1956 = vrot.lane.b32.xlu1 %v2287_v52, %s2856_s11 }
0x1a3f   :  { %v1935_v61 = vpop.xlane.xlu1 %1934 }
0x1a40   :  { %v1936_v51 = vmul.f32 0.03125, %v1935_v61 }
0x1a42   :  { %v1937_v42 = vadd.f32 1e-06, %v1936_v51 }
0x1a43   :  { %v1957_v40 = vpop.permute.xlu1 %1956 }
0x1a44   :  { %2811 = vrsqrt.f32 %v1937_v42 }
0x1a4e   :  { %v2812_v1 = vpop.eup %2811 }
0x1a4f   :  { %v1939_v63 = vmul.f32 %v2812_v1, %v1927_v45 }
0x1a51   :  { %v1949_v59 = vmul.f32 %v1947_v39, %v1939_v63 }
0x1a53   :  { %v1959_v53 = vadd.f32 %v1957_v40, %v1949_v59 }
0x1a55   :  { %v1969_v21 = vpack.c.bf16 %v1959_v53, %v1959_v53 }
0x1a57   :  { %1971 = vrot.lane.b32.xlu0 %v1969_v21, %s2855_s24 }
0x1ac9   :  { %v1972_v14 = vpop.permute.xlu0 %1971 }
0x1aca   :  { %2643 = vmatmul.mubr.msk.bf16.vlgmr.msra.gmra.mrb[44].mxu1 %vm55_vm1, %v1972_v14 }
0x1acb   :  { %2666 = vmatprep.mubr.msk.bf16.mxu1 %vm2852_vm0, %v2851_v0  ;;  %2655 = vmatpush3.bf16.msra.mxu1 %v2701_v2 }
0x1acc   :  { %2656 = vmatprep.subr.bf16.mxu1 %v2851_v0 }
0x1acf   :  { %2657 = vmatpush3.bf16.msra.mxu1 %v2702_v57 }
0x1ad0   :  { %2658 = vmatprep.subr.bf16.mxu1 %v2851_v0 }
0x1ad3   :  { %2659 = vmatpush3.bf16.msra.mxu1 %v2703_v3 }
0x1ad4   :  { %2660 = vmatprep.subr.bf16.mxu1 %v2851_v0 }
0x1ad7   :  { %2661 = vmatpush3.bf16.msra.mxu1 %v2704_v19 }
0x1ad8   :  { %2662 = vmatprep.subr.bf16.mxu1 %v2851_v0 }
0x1adb   :  { %2663 = vmatpush3.bf16.msra.mxu1 %v2705_v62 }
0x1adc   :  { %2664 = vmatprep.subr.bf16.mxu1 %v2851_v0 }
0x1adf   :  { %2665 = vmatpush3.bf16.msra.mxu1 %v2706_v4 }
0x1b9d   :  { %v2022_v5 = vpop.f32.mrb[44].mxu1 }
0x1b9e   :  { %v2078_v7 = vadd.f32 %v3346_v15, %v2022_v5  ;;  %v2644_v8 = vpop.f32.mrb[45].mxu1 }
0x1b9f   :  { %v2025_v9 = vpop.f32.mrb[46].mxu1 }
0x1ba0   :  { %v2088_v11 = vadd.f32 %v2294_v6, %v2078_v7  ;;  %v2645_v12 = vpop.f32.mrb[47].mxu1 }
0x1ba2   :  { %v2090_v13 = vmul.f32 0.70710677, %v2088_v11  ;;  %v2089_v37 = vmul.f32 0.5, %v2088_v11 }
0x1ba4   :  { %v2093_v17 = vand.u32 2147483647, %v2090_v13  ;;  %vm2091_vm4 = vcmp.ge.f32.partialorder %v2090_v13, 0.0 }
0x1ba5   :  { %v2092_v34 = vsel %vm2091_vm4, 1.0, %v2854_v16 }
0x1ba6   :  { %v2094_v18 = vmul.f32 0.3275911, %v2093_v17  ;;  %v2106_v10 = vsub.f32 0.0, %v2093_v17 }
0x1ba8   :  { %v2095_v20 = vadd.f32 1.0, %v2094_v18  ;;  %v2107_v22 = vmul.f32 %v2106_v10, %v2093_v17 }
0x1baa   :  { %2813 = vrcp.f32 %v2095_v20  ;;  %v2108_v24 = vmul.f32 1.442695, %v2107_v22 }
0x1bac   :  { %2815 = vpow2.f32 %v2108_v24 }
0x1bb4   :  { %v2814_v0 = vpop.eup %2813 }
0x1bb5   :  { %v2097_v23 = vmul.f32 1.0614054, %v2814_v0 }
0x1bb6   :  { %v2816_v31 = vpop.eup %2815 }
0x1bb7   :  { %v2098_v60 = vadd.f32 -1.4531521, %v2097_v23 }
0x1bb9   :  { %v2099_v25 = vmul.f32 %v2814_v0, %v2098_v60 }
0x1bbb   :  { %v2100_v26 = vadd.f32 1.4214138, %v2099_v25 }
0x1bbd   :  { %v2101_v27 = vmul.f32 %v2814_v0, %v2100_v26 }
0x1bbf   :  { %v2102_v15 = vadd.f32 -0.28449672, %v2101_v27 }
0x1bc1   :  { %v2103_v28 = vmul.f32 %v2814_v0, %v2102_v15 }
0x1bc3   :  { %v2104_v29 = vadd.f32 0.2548296, %v2103_v28 }
0x1bc5   :  { %v2105_v30 = vmul.f32 %v2814_v0, %v2104_v29 }
0x1bc7   :  { %v2110_v32 = vmul.f32 %v2816_v31, %v2105_v30 }
0x1bc9   :  { %v2111_v54 = vsub.f32 1.0, %v2110_v32 }
0x1bcb   :  { %v2112_v36 = vmul.f32 %v2111_v54, %v2092_v34 }
0x1bcd   :  { %v2113_v38 = vadd.f32 1.0, %v2112_v36 }
0x1bcf   :  { %v2114_v41 = vmul.f32 %v2113_v38, %v2089_v37 }
0x1bd1   :  { %v2127_v43 = vpack.c.bf16 %v2114_v41, %v2114_v41 }
0x1bd3   :  { %2667 = vmatmul.mubr.msk.bf16.vlgmr.msra.gmra.mrb[48].mxu1 %vm2169_vm5, %v2127_v43 }
0x1ca6   :  { %v2207_v48 = vpop.f32.mrb[48].mxu1 }
0x1ca7   :  { %v2208_v47 = vadd.f32 %v2295_v46, %v2207_v48  ;;  %v2668_v55 = vpop.f32.mrb[49].mxu1 }
0x1ca8   :  { %v2210_v50 = vpop.f32.mrb[50].mxu1 }
0x1ca9   :  { %2213 = vst [vmem:[%s3390_s4] sm:$0xff] %v2208_v47  ;;  %v2669_v16 = vpop.f32.mrb[51].mxu1 }
0x1caa   :  { %2218 = vsyncpa [#allocation3], 1 }

</bundles_post_ra>
